<compile_context>
chip_gen: v7x
topology: tpu7x:2x2x1
jax: 0.10.0
libtpu: 0.0.40
codegen_flags: <defaults>
</compile_context>

<pallas_src>
import jax
import jax.numpy as jnp
from jax.experimental import pallas as pl
from jax.experimental.pallas import tpu as pltpu

# ----------------------------- model sizes ---------------------------------
B = 256       # total batch (many samples per call -> MXU actually gets fed)
TB = 128      # batch rows per grid step (VMEM per step ~ a few hundred KiB)
X_DIM = 256   # flattened input dim
H_DIM = 128   # hidden dim
Z_DIM = 128   # latent dim


# ------------------------------ Pallas kernel ------------------------------
def vae_kernel(x_ref,
               w1_ref, b1_ref,          # encoder hidden  (bf16 W, f32 b)
               wh_ref, bh_ref,          # fused [mu | log_var] head
               wd1_ref, bd1_ref,        # decoder hidden
               wd2_ref, bd2_ref,        # decoder output
               eps_ref,                 # N(0,1) noise for reparameterization
               xrec_ref, mu_ref, lv_ref):
    # ---- encoder ----
    x = x_ref[...].astype(jnp.bfloat16)
    h = jnp.dot(x, w1_ref[...], preferred_element_type=jnp.float32) + b1_ref[...]
    h = jnp.maximum(h, 0.0)  # ReLU (f32)

    # fused mu/log_var head: one (TB,H) @ (H, 2Z) matmul, then 128-aligned slices
    head = jnp.dot(h.astype(jnp.bfloat16), wh_ref[...],
                   preferred_element_type=jnp.float32) + bh_ref[...]
    mu = head[:, :Z_DIM]
    log_var = head[:, Z_DIM:]

    # ---- reparameterize: z = mu + exp(0.5 * log_var) * eps (all f32) ----
    std = jnp.exp(0.5 * log_var)
    z = mu + std * eps_ref[...]

    # ---- decoder ----
    hd = jnp.dot(z.astype(jnp.bfloat16), wd1_ref[...],
                 preferred_element_type=jnp.float32) + bd1_ref[...]
    hd = jnp.maximum(hd, 0.0)  # ReLU (f32)
    logits = jnp.dot(hd.astype(jnp.bfloat16), wd2_ref[...],
                     preferred_element_type=jnp.float32) + bd2_ref[...]
    xrec_ref[...] = jax.nn.sigmoid(logits)
    mu_ref[...] = mu
    lv_ref[...] = log_var


# ------------------------------ wrapper ------------------------------------
def vae_forward(x, params, eps):
    """Full VAE forward, gridded over the batch; weights stay VMEM-resident."""
    w1, b1, wh, bh, wd1, bd1, wd2, bd2 = params
    grid = (B // TB,)

    in_specs = [
        pl.BlockSpec((TB, X_DIM), lambda i: (i, 0)),         # x (batched)
        pl.BlockSpec((X_DIM, H_DIM), lambda i: (0, 0)),      # w1 (resident)
        pl.BlockSpec((1, H_DIM), lambda i: (0, 0)),          # b1
        pl.BlockSpec((H_DIM, 2 * Z_DIM), lambda i: (0, 0)),  # wh (fused head)
        pl.BlockSpec((1, 2 * Z_DIM), lambda i: (0, 0)),      # bh
        pl.BlockSpec((Z_DIM, H_DIM), lambda i: (0, 0)),      # wd1
        pl.BlockSpec((1, H_DIM), lambda i: (0, 0)),          # bd1
        pl.BlockSpec((H_DIM, X_DIM), lambda i: (0, 0)),      # wd2
        pl.BlockSpec((1, X_DIM), lambda i: (0, 0)),          # bd2
        pl.BlockSpec((TB, Z_DIM), lambda i: (i, 0)),         # eps (batched)
    ]
    out_specs = (
        pl.BlockSpec((TB, X_DIM), lambda i: (i, 0)),         # x_reconst
        pl.BlockSpec((TB, Z_DIM), lambda i: (i, 0)),         # mu
        pl.BlockSpec((TB, Z_DIM), lambda i: (i, 0)),         # log_var
    )
    out_shapes = (
        jax.ShapeDtypeStruct((B, X_DIM), jnp.float32),
        jax.ShapeDtypeStruct((B, Z_DIM), jnp.float32),
        jax.ShapeDtypeStruct((B, Z_DIM), jnp.float32),
    )

    flops = 2 * B * (X_DIM * H_DIM + H_DIM * 2 * Z_DIM + Z_DIM * H_DIM
                     + H_DIM * X_DIM)
    transcendentals = B * (Z_DIM + X_DIM)          # exp + sigmoid
    bytes_accessed = (
        x.size * x.dtype.itemsize
        + eps.size * eps.dtype.itemsize
        + sum(p.size * p.dtype.itemsize for p in params)
        + B * X_DIM * 4 + 2 * B * Z_DIM * 4
    )

    fn = pl.pallas_call(
        vae_kernel,
        out_shape=out_shapes,
        grid=grid,
        in_specs=in_specs,
        out_specs=out_specs,
        compiler_params=pltpu.CompilerParams(
            dimension_semantics=("parallel",)),     # shard batch over v7x's 2 TCs
        cost_estimate=pl.CostEstimate(
            flops=flops,
            transcendentals=transcendentals,
            bytes_accessed=bytes_accessed),
    )
    return fn(x, w1, b1, wh, bh, wd1, bd1, wd2, bd2, eps)


def init_params(key):
    """Deterministic init. Weights stored bf16 (MXU operands); biases f32."""
    ks = jax.random.split(key, 5)

    def lin(k, fan_in, fan_out):
        scale = 1.0 / jnp.sqrt(jnp.float32(fan_in))
        w = jax.random.uniform(k, (fan_in, fan_out), jnp.float32, -scale, scale)
        b = jnp.zeros((1, fan_out), jnp.float32)  # 2D -> lane-friendly layout
        return w.astype(jnp.bfloat16), b

    w1, b1 = lin(ks[0], X_DIM, H_DIM)
    wmu, bmu = lin(ks[1], H_DIM, Z_DIM)
    wlv, blv = lin(ks[2], H_DIM, Z_DIM)
    wd1, bd1 = lin(ks[3], Z_DIM, H_DIM)
    wd2, bd2 = lin(ks[4], H_DIM, X_DIM)

    # fuse mu / log_var heads into one (H, 2Z) weight + (1, 2Z) bias
    wh = jnp.concatenate([wmu, wlv], axis=1)
    bh = jnp.concatenate([bmu, blv], axis=1)
    return (w1, b1, wh, bh, wd1, bd1, wd2, bd2)


def vae_ref(x, params, eps):
    """Pure-JAX reference (bf16-rounded matmul operands, f32 accumulation)."""
    w1, b1, wh, bh, wd1, bd1, wd2, bd2 = params
    bf = lambda a: a.astype(jnp.bfloat16).astype(jnp.float32)
    f32 = lambda a: a.astype(jnp.float32)

    h = jnp.maximum(bf(x) @ f32(w1) + b1, 0.0)
    head = bf(h) @ f32(wh) + bh
    mu, log_var = head[:, :Z_DIM], head[:, Z_DIM:]
    z = mu + jnp.exp(0.5 * log_var) * eps
    hd = jnp.maximum(bf(z) @ f32(wd1) + bd1, 0.0)
    x_reconst = jax.nn.sigmoid(bf(hd) @ f32(wd2) + bd2)
    return x_reconst, mu, log_var


# ------------------------------ main ---------------------------------------
if __name__ == "__main__":
    key = jax.random.PRNGKey(0)
    k_x, k_eps, k_params = jax.random.split(key, 3)

    x = jax.random.normal(k_x, (B, X_DIM), jnp.float32)
    # eps drawn outside the kernel: a deterministic stand-in for torch.randn_like
    # that keeps the kernel bit-checkable against the pure-JAX reference.
    # TODO(synk): optionally move noise generation in-kernel via pltpu.prng_seed +
    # pltpu.stateful_normal to drop one HBM input stream.
    eps = jax.random.normal(k_eps, (B, Z_DIM), jnp.float32)
    params = init_params(k_params)

    x_reconst, mu, log_var = vae_forward(x, params, eps)
    jax.block_until_ready((x_reconst, mu, log_var))

    # sanity check against pure-JAX reference (bf16-operand matmuls)
    xr_ref, mu_r, lv_r = vae_ref(x, params, eps)
    assert jnp.allclose(x_reconst, xr_ref, atol=5e-3, rtol=5e-3)
    assert jnp.allclose(mu, mu_r, atol=5e-3, rtol=5e-3)
    assert jnp.allclose(log_var, lv_r, atol=5e-3, rtol=5e-3)

    print("KERNEL_OK")
</pallas_src>

<mosaic_0001>
module attributes {stable_mosaic.version = 11 : i64} {
  func.func @vae_kernel(%arg0: i32, %arg1: memref<128x256xf32, #tpu.memory_space<vmem>>, %arg2: memref<256x128xbf16, #tpu.memory_space<vmem>>, %arg3: memref<1x128xf32, #tpu.memory_space<vmem>>, %arg4: memref<128x256xbf16, #tpu.memory_space<vmem>>, %arg5: memref<1x256xf32, #tpu.memory_space<vmem>>, %arg6: memref<128x128xbf16, #tpu.memory_space<vmem>>, %arg7: memref<1x128xf32, #tpu.memory_space<vmem>>, %arg8: memref<128x256xbf16, #tpu.memory_space<vmem>>, %arg9: memref<1x256xf32, #tpu.memory_space<vmem>>, %arg10: memref<128x128xf32, #tpu.memory_space<vmem>>, %arg11: memref<128x256xf32, #tpu.memory_space<vmem>>, %arg12: memref<128x128xf32, #tpu.memory_space<vmem>>, %arg13: memref<128x128xf32, #tpu.memory_space<vmem>>) attributes {dimension_semantics = [#tpu.dimension_semantics<parallel>], iteration_bounds = array<i64: 2>, scalar_prefetch = 0 : i64, scratch_operands = 0 : i64, tpu.core_type = #tpu.core_type<tc>, window_params = [{transform_indices = @transform_0, window_bounds = array<i64: 128, 256>}, {pipeline_mode = #tpu.pipeline_mode<synchronous>, transform_indices = @transform_1, window_bounds = array<i64: 256, 128>}, {pipeline_mode = #tpu.pipeline_mode<synchronous>, transform_indices = @transform_2, window_bounds = array<i64: 1, 128>}, {pipeline_mode = #tpu.pipeline_mode<synchronous>, transform_indices = @transform_3, window_bounds = array<i64: 128, 256>}, {pipeline_mode = #tpu.pipeline_mode<synchronous>, transform_indices = @transform_4, window_bounds = array<i64: 1, 256>}, {pipeline_mode = #tpu.pipeline_mode<synchronous>, transform_indices = @transform_5, window_bounds = array<i64: 128, 128>}, {pipeline_mode = #tpu.pipeline_mode<synchronous>, transform_indices = @transform_6, window_bounds = array<i64: 1, 128>}, {pipeline_mode = #tpu.pipeline_mode<synchronous>, transform_indices = @transform_7, window_bounds = array<i64: 128, 256>}, {pipeline_mode = #tpu.pipeline_mode<synchronous>, transform_indices = @transform_8, window_bounds = array<i64: 1, 256>}, {transform_indices = @transform_9, window_bounds = array<i64: 128, 128>}, {transform_indices = @transform_10, window_bounds = array<i64: 128, 256>}, {transform_indices = @transform_11, window_bounds = array<i64: 128, 128>}, {transform_indices = @transform_12, window_bounds = array<i64: 128, 128>}]} {
    %c0 = arith.constant 0 : index
    %c0_0 = arith.constant 0 : index
    %0 = vector.load %arg1[%c0, %c0_0] : memref<128x256xf32, #tpu.memory_space<vmem>>, vector<128x256xf32>
    %1 = arith.truncf %0 : vector<128x256xf32> to vector<128x256xbf16>
    %c0_1 = arith.constant 0 : index
    %c0_2 = arith.constant 0 : index
    %2 = vector.load %arg2[%c0_1, %c0_2] : memref<256x128xbf16, #tpu.memory_space<vmem>>, vector<256x128xbf16>
    %cst = arith.constant dense<0.000000e+00> : vector<128x128xf32>
    %3 = tpu.matmul %1, %2, %cst {dimension_numbers = #tpu.dot_dimension_numbers<[1], [0], [0], [1], [0, 0, 1, 1], [], []>} : vector<128x256xbf16>, vector<256x128xbf16>, vector<128x128xf32> -> vector<128x128xf32>
    %c0_3 = arith.constant 0 : index
    %c0_4 = arith.constant 0 : index
    %4 = vector.load %arg3[%c0_3, %c0_4] : memref<1x128xf32, #tpu.memory_space<vmem>>, vector<1x128xf32>
    %5 = vector.broadcast %4 : vector<1x128xf32> to vector<128x128xf32>
    %6 = arith.addf %3, %5 : vector<128x128xf32>
    %cst_5 = arith.constant 0.000000e+00 : f32
    %7 = vector.broadcast %cst_5 : f32 to vector<128x128xf32>
    %8 = arith.maximumf %6, %7 : vector<128x128xf32>
    %9 = arith.truncf %8 : vector<128x128xf32> to vector<128x128xbf16>
    %c0_6 = arith.constant 0 : index
    %c0_7 = arith.constant 0 : index
    %10 = vector.load %arg4[%c0_6, %c0_7] : memref<128x256xbf16, #tpu.memory_space<vmem>>, vector<128x256xbf16>
    %cst_8 = arith.constant dense<0.000000e+00> : vector<128x256xf32>
    %11 = tpu.matmul %9, %10, %cst_8 {dimension_numbers = #tpu.dot_dimension_numbers<[1], [0], [0], [1], [0, 0, 1, 1], [], []>} : vector<128x128xbf16>, vector<128x256xbf16>, vector<128x256xf32> -> vector<128x256xf32>
    %c0_9 = arith.constant 0 : index
    %c0_10 = arith.constant 0 : index
    %12 = vector.load %arg5[%c0_9, %c0_10] : memref<1x256xf32, #tpu.memory_space<vmem>>, vector<1x256xf32>
    %13 = vector.broadcast %12 : vector<1x256xf32> to vector<128x256xf32>
    %14 = arith.addf %11, %13 : vector<128x256xf32>
    %15 = vector.extract_strided_slice %14 {offsets = [0, 0], sizes = [128, 128], strides = [1, 1]} : vector<128x256xf32> to vector<128x128xf32>
    %16 = vector.extract_strided_slice %14 {offsets = [0, 128], sizes = [128, 128], strides = [1, 1]} : vector<128x256xf32> to vector<128x128xf32>
    %cst_11 = arith.constant 5.000000e-01 : f32
    %17 = vector.broadcast %cst_11 : f32 to vector<128x128xf32>
    %18 = arith.mulf %17, %16 : vector<128x128xf32>
    %19 = math.exp %18 : vector<128x128xf32>
    %c0_12 = arith.constant 0 : index
    %c0_13 = arith.constant 0 : index
    %20 = vector.load %arg10[%c0_12, %c0_13] : memref<128x128xf32, #tpu.memory_space<vmem>>, vector<128x128xf32>
    %21 = arith.mulf %19, %20 : vector<128x128xf32>
    %22 = arith.addf %15, %21 : vector<128x128xf32>
    %23 = arith.truncf %22 : vector<128x128xf32> to vector<128x128xbf16>
    %c0_14 = arith.constant 0 : index
    %c0_15 = arith.constant 0 : index
    %24 = vector.load %arg6[%c0_14, %c0_15] : memref<128x128xbf16, #tpu.memory_space<vmem>>, vector<128x128xbf16>
    %cst_16 = arith.constant dense<0.000000e+00> : vector<128x128xf32>
    %25 = tpu.matmul %23, %24, %cst_16 {dimension_numbers = #tpu.dot_dimension_numbers<[1], [0], [0], [1], [0, 0, 1, 1], [], []>} : vector<128x128xbf16>, vector<128x128xbf16>, vector<128x128xf32> -> vector<128x128xf32>
    %c0_17 = arith.constant 0 : index
    %c0_18 = arith.constant 0 : index
    %26 = vector.load %arg7[%c0_17, %c0_18] : memref<1x128xf32, #tpu.memory_space<vmem>>, vector<1x128xf32>
    %27 = vector.broadcast %26 : vector<1x128xf32> to vector<128x128xf32>
    %28 = arith.addf %25, %27 : vector<128x128xf32>
    %cst_19 = arith.constant 0.000000e+00 : f32
    %29 = vector.broadcast %cst_19 : f32 to vector<128x128xf32>
    %30 = arith.maximumf %28, %29 : vector<128x128xf32>
    %31 = arith.truncf %30 : vector<128x128xf32> to vector<128x128xbf16>
    %c0_20 = arith.constant 0 : index
    %c0_21 = arith.constant 0 : index
    %32 = vector.load %arg8[%c0_20, %c0_21] : memref<128x256xbf16, #tpu.memory_space<vmem>>, vector<128x256xbf16>
    %cst_22 = arith.constant dense<0.000000e+00> : vector<128x256xf32>
    %33 = tpu.matmul %31, %32, %cst_22 {dimension_numbers = #tpu.dot_dimension_numbers<[1], [0], [0], [1], [0, 0, 1, 1], [], []>} : vector<128x128xbf16>, vector<128x256xbf16>, vector<128x256xf32> -> vector<128x256xf32>
    %c0_23 = arith.constant 0 : index
    %c0_24 = arith.constant 0 : index
    %34 = vector.load %arg9[%c0_23, %c0_24] : memref<1x256xf32, #tpu.memory_space<vmem>>, vector<1x256xf32>
    %35 = vector.broadcast %34 : vector<1x256xf32> to vector<128x256xf32>
    %36 = arith.addf %33, %35 : vector<128x256xf32>
    %37 = arith.negf %36 : vector<128x256xf32>
    %38 = math.exp %37 : vector<128x256xf32>
    %cst_25 = arith.constant 1.000000e+00 : f32
    %39 = vector.broadcast %cst_25 : f32 to vector<128x256xf32>
    %40 = arith.addf %39, %38 : vector<128x256xf32>
    %41 = arith.divf %39, %40 : vector<128x256xf32>
    %c0_26 = arith.constant 0 : index
    %c0_27 = arith.constant 0 : index
    %42 = vector.load %arg11[%c0_26, %c0_27] : memref<128x256xf32, #tpu.memory_space<vmem>>, vector<128x256xf32>
    tpu.vector_store %arg11[%c0_26, %c0_27], %41 {strides = array<i32>} : memref<128x256xf32, #tpu.memory_space<vmem>>, vector<128x256xf32>,
    %c0_28 = arith.constant 0 : index
    %c0_29 = arith.constant 0 : index
    %43 = vector.load %arg12[%c0_28, %c0_29] : memref<128x128xf32, #tpu.memory_space<vmem>>, vector<128x128xf32>
    tpu.vector_store %arg12[%c0_28, %c0_29], %15 {strides = array<i32>} : memref<128x128xf32, #tpu.memory_space<vmem>>, vector<128x128xf32>,
    %c0_30 = arith.constant 0 : index
    %c0_31 = arith.constant 0 : index
    %44 = vector.load %arg13[%c0_30, %c0_31] : memref<128x128xf32, #tpu.memory_space<vmem>>, vector<128x128xf32>
    tpu.vector_store %arg13[%c0_30, %c0_31], %16 {strides = array<i32>} : memref<128x128xf32, #tpu.memory_space<vmem>>, vector<128x128xf32>,
    return
  }
  func.func @transform_0(%arg0: i32) -> (i32, i32) {
    %c0_i32 = arith.constant 0 : i32
    %c0_i32_0 = arith.constant 0 : i32
    return %arg0, %c0_i32 : i32, i32
  }
  func.func @transform_1(%arg0: i32) -> (i32, i32) {
    %c0_i32 = arith.constant 0 : i32
    %c0_i32_0 = arith.constant 0 : i32
    %c0_i32_1 = arith.constant 0 : i32
    return %c0_i32, %c0_i32_0 : i32, i32
  }
  func.func @transform_2(%arg0: i32) -> (i32, i32) {
    %c0_i32 = arith.constant 0 : i32
    %c0_i32_0 = arith.constant 0 : i32
    %c0_i32_1 = arith.constant 0 : i32
    return %c0_i32, %c0_i32_0 : i32, i32
  }
  func.func @transform_3(%arg0: i32) -> (i32, i32) {
    %c0_i32 = arith.constant 0 : i32
    %c0_i32_0 = arith.constant 0 : i32
    %c0_i32_1 = arith.constant 0 : i32
    return %c0_i32, %c0_i32_0 : i32, i32
  }
  func.func @transform_4(%arg0: i32) -> (i32, i32) {
    %c0_i32 = arith.constant 0 : i32
    %c0_i32_0 = arith.constant 0 : i32
    %c0_i32_1 = arith.constant 0 : i32
    return %c0_i32, %c0_i32_0 : i32, i32
  }
  func.func @transform_5(%arg0: i32) -> (i32, i32) {
    %c0_i32 = arith.constant 0 : i32
    %c0_i32_0 = arith.constant 0 : i32
    %c0_i32_1 = arith.constant 0 : i32
    return %c0_i32, %c0_i32_0 : i32, i32
  }
  func.func @transform_6(%arg0: i32) -> (i32, i32) {
    %c0_i32 = arith.constant 0 : i32
    %c0_i32_0 = arith.constant 0 : i32
    %c0_i32_1 = arith.constant 0 : i32
    return %c0_i32, %c0_i32_0 : i32, i32
  }
  func.func @transform_7(%arg0: i32) -> (i32, i32) {
    %c0_i32 = arith.constant 0 : i32
    %c0_i32_0 = arith.constant 0 : i32
    %c0_i32_1 = arith.constant 0 : i32
    return %c0_i32, %c0_i32_0 : i32, i32
  }
  func.func @transform_8(%arg0: i32) -> (i32, i32) {
    %c0_i32 = arith.constant 0 : i32
    %c0_i32_0 = arith.constant 0 : i32
    %c0_i32_1 = arith.constant 0 : i32
    return %c0_i32, %c0_i32_0 : i32, i32
  }
  func.func @transform_9(%arg0: i32) -> (i32, i32) {
    %c0_i32 = arith.constant 0 : i32
    %c0_i32_0 = arith.constant 0 : i32
    return %arg0, %c0_i32 : i32, i32
  }
  func.func @transform_10(%arg0: i32) -> (i32, i32) {
    %c0_i32 = arith.constant 0 : i32
    %c0_i32_0 = arith.constant 0 : i32
    return %arg0, %c0_i32 : i32, i32
  }
  func.func @transform_11(%arg0: i32) -> (i32, i32) {
    %c0_i32 = arith.constant 0 : i32
    %c0_i32_0 = arith.constant 0 : i32
    return %arg0, %c0_i32 : i32, i32
  }
  func.func @transform_12(%arg0: i32) -> (i32, i32) {
    %c0_i32 = arith.constant 0 : i32
    %c0_i32_0 = arith.constant 0 : i32
    return %arg0, %c0_i32 : i32, i32
  }
}

</mosaic_0001>

<bundles_post_ra>
// kernel: tpu_custom_call.1
= control target key start
LH: loop header
LB: loop body
LE: loop exit
PB: predicated region body
PF: predicated region fallthrough
CT: control target
= control target key end

     0   :  { %s3862_s0 = inlined_call_operand.hbm [shape: f32[256,256], index: 0, kind: input, shape index: {}]   ;;  %s3863_s1 = inlined_call_operand.hbm [shape: bf16[256,128], index: 1, kind: input, shape index: {}]   ;;  %s3864_s2 = inlined_call_operand.vmem [shape: f32[1,128], index: 2, kind: input, shape index: {}]   ;;  %s3865_s3 = inlined_call_operand.hbm [shape: bf16[128,256], index: 3, kind: input, shape index: {}]   ;;  %s3866_s4 = inlined_call_operand.vmem [shape: f32[1,256], index: 4, kind: input, shape index: {}]   ;;  %s3867_s5 = inlined_call_operand.hbm [shape: bf16[128,128], index: 5, kind: input, shape index: {}]   ;;  %s3868_s6 = inlined_call_operand.vmem [shape: f32[1,128], index: 6, kind: input, shape index: {}]   ;;  %s3869_s7 = inlined_call_operand.hbm [shape: bf16[128,256], index: 7, kind: input, shape index: {}]   ;;  %s3870_s8 = inlined_call_operand.vmem [shape: f32[1,256], index: 8, kind: input, shape index: {}]   ;;  %s3871_s9 = inlined_call_operand.hbm [shape: f32[256,128], index: 9, kind: input, shape index: {}]   ;;  %s3872_s10 = inlined_call_operand.hbm [shape: f32[256,256], index: 10, kind: output, shape index: {0}]   ;;  %s3873_s11 = inlined_call_operand.hbm [shape: f32[256,128], index: 11, kind: output, shape index: {1}]   ;;  %s3874_s12 = inlined_call_operand.hbm [shape: f32[256,128], index: 12, kind: output, shape index: {2}]  }
   0x1   :  { %3886 = sst [smem:[#allocation25_spill]] %s3862_s0 }
   0x2   :  { %3887 = sst [smem:[#allocation26_spill]] %s3863_s1 }
   0x3   :  { %3888 = sst [smem:[#allocation27_spill]] %s3865_s3 }
   0x4   :  { %3889 = sst [smem:[#allocation28_spill]] %s3870_s8 }
   0x5   :  { %3890 = sst [smem:[#allocation29_spill]] %s3872_s10 }
   0x6   :  { %3891 = sst [smem:[#allocation30_spill]] %s3873_s11 }
   0x7   :  { %3892 = sst [smem:[#allocation31_spill]] %s3874_s12 }
   0x8   :  { %18 = vsyncpa [#allocation3], 0 }
   0x9   :  { %20 = vsyncpa [#allocation3 + $0x1], 0 }
   0xa   :  { %21 = vsyncpa [#allocation6], 0 }
   0xb   :  { %22 = vsyncpa [#allocation9], 0 }
   0xc   :  { %23 = vsyncpa [#allocation12], 0 }
   0xd   :  { %25 = vsyncpa [#allocation12 + $0x1], 0 }
   0xe   :  { %26 = vsyncpa [#allocation4], 0 }
   0xf   :  { %28 = vsyncpa [#allocation4 + $0x1], 0 }
  0x10   :  { %29 = vsyncpa [#allocation15], 0 }
  0x11   :  { %31 = vsyncpa [#allocation15 + $0x1], 0  ;;  %s3108_s21 = smov 0   ;;  %s3110_s22 = smov 0  }
  0x12   :  { %s3112_s23 = smov 0   ;;  %s3114_s24 = smov 0  }
  0x13 LB: > { %3893 = sst [smem:[#allocation23_spill]] %s3009_s21  ;;  %s3129_s25 = sadd.s32 4294967295, %s3021_s24   ;;  %s3021_s24 = sphi %s3114_s24, %s3927_s24   ;;  %s3017_s23 = sphi %s3112_s23, %s3926_s23   ;;  %s3013_s22 = sphi %s3110_s22, %s3925_s22   ;;  %s3009_s21 = sphi %s3108_s21, %s3924_s21  }
  0x14   : > { %s3875_s26 = sadd.s32 4294967294, %s3021_s24   ;;  %p57_p0 = scmp.ne.s32.totalorder %s3013_s22, %s3009_s21 }
  0x15   : > { %p3878_p1 = scmp.eq.s32.totalorder %s3129_s25, 0  ;;  %p281_p3 = scmp.eq.s32.totalorder %s3875_s26, 1 }
  0x16   : > { %p2106_p5 = scmp.ge.s32.totalorder %s3021_s24, 1  ;;  %p340_p7 = scmp.lt.s32.totalorder %s3021_s24, 3 }
  0x17   : > { %p3140_p4 = por %p3878_p1, %p57_p0  ;;  %p3145_p6 = por %p281_p3, %p57_p0 }
  0x18   : > { %p3150_p8 = pnand %p2106_p5, %p340_p7  ;;  %s3023_s30 = smov [#allocation5]  }
  0x19   : > { %s3894_s27 = scalar_select %p3140_p4, 1, 0 }
  0x1a   : > { %s3895_s28 = scalar_select %p3145_p6, 1, 0 }
  0x1b   : > { %s3897_s29 = scalar_select %p3150_p8, 1, 0 }
  0x1c   : > { %3896 = sst [smem:[#allocation24_spill]] %s3895_s28  ;;  %s352_s13 = sshll.u32 %s3023_s30, 4  ;;  %s3154_s13 = int_to_ptr.vmem [resolvable:$true] %s352_s13 }
  0x1d   : > { %p2392_p9 = pneg %p3150_p8  ;;  %s3024_s15 = smov [#allocation8]  }
  0x1e   : > { %s384_s16 = sshll.u32 %s3024_s15, 4  ;;  %s3025_s17 = smov [#allocation7]   ;;  %s3165_s16 = int_to_ptr.vmem [resolvable:$true] %s384_s16 }
  0x1f   : > { %p3161_p11 = pnand %p2392_p9, %p3878_p1  ;;  %s3167_s18 = sshll.u32 %s3025_s17, 4  ;;  %s369_s18 = int_to_ptr.vmem [resolvable:$true] %s3167_s18 }
  0x20   : > { %s3899_s1 = sld [smem:[#allocation26_spill]] }
  0x21   : > { %p3177_p13 = pneg %p3161_p11 }
  0x26   : > { %s2711_s30 = scalar_lea.hbm %s3899_s1, 2048 }
  0x27   : > { %p2712_p12 = scmp.ne.s32.totalorder %s3899_s1, %s2711_s30  ;;  %p2718_p5 = scmp.lt.u32.totalorder %s2711_s30, %s3899_s1 }
  0x29   : > { %p2714_p0 = pnand %p3177_p13, %p2712_p12 }
  0x2b   : > { %p2715_p3 = pneg %p2714_p0 }
  0x2d   : > { %p2720_p7 = pnand %p2718_p5, %p2715_p3 }
  0x2f   : > { %2723 = shalt.err (!%p2720_p7)
}
  0x30   : > { %s2724_s26 = scalar_lea.vmem %s3154_s13, 2048  ;;  %p2732_p2 = scmp.lt.s32.totalorder %s3154_s13, %s3154_s13 }
  0x31   : > { %p2725_p9 = scmp.ne.s32.totalorder %s3154_s13, %s2724_s26  ;;  %p2733_p6 = scmp.lt.s32.totalorder %s2724_s26, %s2724_s26 }
  0x33   : > { %p2727_p10 = pnand %p2725_p9, %p3177_p13  ;;  %p2734_p12 = por %p2733_p6, %p2732_p2 }
  0x35   : > { %p2728_p1 = pneg %p2727_p10 }
  0x37   : > { %p2735_p0 = pnand %p2734_p12, %p2728_p1 }
  0x39   : > { %2738 = shalt.err (!%p2735_p0)
}
  0x3a   : > { %s3026_s28 = smov 64   ;;  %s3027_s19 = smov 4  }
  0x3b   : > { %2395 = dma.hbm_to_vmem [thread:$0]  (!%p3161_p11), %s3899_s1, 2048, %s3154_s13, [#allocation6], %s3026_s28, %s3026_s28, %s3027_s19  }
  0x3c   : > { %s2739_s10 = scalar_lea.hbm %s3867_s5, 1024 }
  0x3d   : > { %p2740_p2 = scmp.ne.s32.totalorder %s3867_s5, %s2739_s10  ;;  %p2746_p10 = scmp.lt.u32.totalorder %s2739_s10, %s3867_s5 }
  0x3f   : > { %p2742_p1 = pnand %p2740_p2, %p3177_p13 }
  0x41   : > { %p2743_p6 = pneg %p2742_p1 }
  0x43   : > { %p2748_p3 = pnand %p2746_p10, %p2743_p6 }
  0x45   : > { %2751 = shalt.err (!%p2748_p3)
}
  0x46   : > { %s2752_s13 = scalar_lea.vmem %s3165_s16, 1024  ;;  %p2760_p12 = scmp.lt.s32.totalorder %s3165_s16, %s3165_s16 }
  0x47   : > { %p2753_p5 = scmp.ne.s32.totalorder %s3165_s16, %s2752_s13  ;;  %p2761_p0 = scmp.lt.s32.totalorder %s2752_s13, %s2752_s13 }
  0x49   : > { %p2755_p7 = pnand %p2753_p5, %p3177_p13  ;;  %p2762_p2 = por %p2761_p0, %p2760_p12 }
  0x4b   : > { %p2756_p9 = pneg %p2755_p7 }
  0x4d   : > { %p2763_p1 = pnand %p2762_p2, %p2756_p9 }
  0x4f   : > { %2766 = shalt.err (!%p2763_p1)
}
  0x50   : > { %2401 = dma.hbm_to_vmem [thread:$0]  (!%p3161_p11), %s3867_s5, 1024, %s3165_s16, [#allocation9], %s3026_s28, %s3026_s28, %s3027_s19  }
  0x51   : > { %s3901_s3 = sld [smem:[#allocation27_spill]] }
  0x57   : > { %s2767_s20 = scalar_lea.hbm %s3901_s3, 2048 }
  0x58   : > { %p2768_p6 = scmp.ne.s32.totalorder %s3901_s3, %s2767_s20  ;;  %p2774_p5 = scmp.lt.u32.totalorder %s2767_s20, %s3901_s3 }
  0x5a   : > { %p2770_p10 = pnand %p2768_p6, %p3177_p13 }
  0x5c   : > { %p2771_p3 = pneg %p2770_p10 }
  0x5e   : > { %p2776_p7 = pnand %p2774_p5, %p2771_p3 }
  0x60   : > { %2779 = shalt.err (!%p2776_p7)
}
  0x61   : > { %s2780_s13 = scalar_lea.vmem %s369_s18, 2048  ;;  %p2788_p2 = scmp.lt.s32.totalorder %s369_s18, %s369_s18 }
  0x62   : > { %p2781_p9 = scmp.ne.s32.totalorder %s369_s18, %s2780_s13  ;;  %p2789_p1 = scmp.lt.s32.totalorder %s2780_s13, %s2780_s13 }
  0x64   : > { %p2783_p12 = pnand %p2781_p9, %p3177_p13  ;;  %p2790_p4 = por %p2789_p1, %p2788_p2 }
  0x66   : > { %p2784_p0 = pneg %p2783_p12 }
  0x68   : > { %p2791_p8 = pnand %p2790_p4, %p2784_p0 }
  0x6a   : > { %2794 = shalt.err (!%p2791_p8)
}
  0x6b   : > { %s3884_s16 = smov 128   ;;  %s3885_s28 = smov 8  }
  0x6c   : > { %2398 = dma.hbm_to_vmem [thread:$0]  (!%p3161_p11), %s3901_s3, 2048, %s369_s18, [#allocation6], %s3884_s16, %s3884_s16, %s3885_s28  }
  0x6d   : > { %s3030_s10 = smov [#allocation10]   ;;  %s2795_s30 = scalar_lea.hbm %s3869_s7, 2048 }
  0x6e   : > { %s400_s11 = sshll.u32 %s3030_s10, 4  ;;  %p2796_p4 = scmp.ne.s32.totalorder %s3869_s7, %s2795_s30  ;;  %s401_s11 = int_to_ptr.vmem [resolvable:$true] %s400_s11 }
  0x6f   : > { %p2802_p10 = scmp.lt.u32.totalorder %s2795_s30, %s3869_s7 }
  0x70   : > { %p2798_p8 = pnand %p2796_p4, %p3177_p13 }
  0x72   : > { %p2799_p6 = pneg %p2798_p8 }
  0x74   : > { %p2804_p3 = pnand %p2802_p10, %p2799_p6 }
  0x76   : > { %2807 = shalt.err (!%p2804_p3)
}
  0x77   : > { %s2808_s18 = scalar_lea.vmem %s401_s11, 2048  ;;  %p2816_p12 = scmp.lt.s32.totalorder %s401_s11, %s401_s11 }
  0x78   : > { %p2809_p5 = scmp.ne.s32.totalorder %s401_s11, %s2808_s18  ;;  %p2817_p0 = scmp.lt.s32.totalorder %s2808_s18, %s2808_s18 }
  0x7a   : > { %p2811_p7 = pnand %p2809_p5, %p3177_p13  ;;  %p2818_p2 = por %p2817_p0, %p2816_p12 }
  0x7c   : > { %p2812_p9 = pneg %p2811_p7 }
  0x7e   : > { %p2819_p1 = pnand %p2818_p2, %p2812_p9 }
  0x80   : > { %2822 = shalt.err (!%p2819_p1)
}
  0x81   : > { %2404 = dma.hbm_to_vmem [thread:$0]  (!%p3161_p11), %s3869_s7, 2048, %s401_s11, [#allocation9], %s3884_s16, %s3884_s16, %s3885_s28  }
  0x82   : > { %s3265_s21 = sadd.s32 1, %s3021_s24   ;;  %s44_s14 = sadd.s32 1, %s3017_s23 }
  0x83   : > { %s41_s10 = ssub.s32 %s3021_s24, %s3265_s21  ;;  %p51_p13 = scmp.ne.s32.totalorder %s3017_s23, %s3013_s22 }
  0x84   : > { %p42_p4 = scmp.eq.s32.totalorder %s41_s10, 0  ;;  %p52_p8 = scmp.eq.s32.totalorder %s3021_s24, 0 }
  0x85   : > { %p3902_p6 = scmp.eq.s32.totalorder %s3129_s25, 1  ;;  %p2426_p3 = scmp.lt.s32.totalorder %s3021_s24, 2 }
  0x86   : > { %s3281_s20 = scalar_select %p42_p4, %s3017_s23, %s44_s14  }
  0x87   : > { %p3275_p10 = por %p3902_p6, %p51_p13  ;;  %p53_p5 = por %p52_p8, %p51_p13 }
  0x88   : > { %s3284_s30 = sand.u32 1, %s3017_s23   ;;  %s2232_s15 = sshll.u32 %s3021_s24, 12 }
  0x89   : > { %s2112_s11 = sshll.u32 %s3284_s30, 8  ;;  %s3904_s0 = sld [smem:[#allocation25_spill]] }
  0x8a   : > { %s421_s18 = scalar_lea.vmem [#allocation2], %s2112_s11  ;;  %p3295_p11 = pnand %p2426_p3, %p53_p5 }
  0x8b   : > { %s429_s19 = sshll.u32 %s421_s18, 4  ;;  %s418_s14 = scalar_lea.sflag [#allocation3], %s3284_s30  ;;  %s3293_s19 = int_to_ptr.vmem [resolvable:$true] %s429_s19 }
  0x8c   : > { %p2825_p9 = pneg %p3295_p11 }
  0x8f   : > { %s3291_s13 = scalar_lea.hbm %s3904_s0, %s2232_s15  ;;  %s2828_s17 = scalar_lea.hbm %s3904_s0, 8192 }
  0x90   : > { %s2823_s10 = scalar_lea.hbm %s3291_s13, 4096  ;;  %p2829_p2 = scmp.lt.u32.totalorder %s3291_s13, %s3904_s0 }
  0x91   : > { %p2824_p7 = scmp.ne.s32.totalorder %s3291_s13, %s2823_s10  ;;  %p2830_p1 = scmp.lt.u32.totalorder %s2828_s17, %s2823_s10 }
  0x92   : > { %p2832_p4 = scmp.lt.u32.totalorder %s2823_s10, %s3291_s13 }
  0x93   : > { %p2826_p12 = pnand %p2825_p9, %p2824_p7  ;;  %p2831_p13 = por %p2830_p1, %p2829_p2 }
  0x95   : > { %p2827_p0 = pneg %p2826_p12  ;;  %p2833_p8 = por %p2832_p4, %p2831_p13 }
  0x97   : > { %p2834_p6 = pnand %p2833_p8, %p2827_p0 }
  0x99   : > { %2837 = shalt.err (!%p2834_p6)
}
  0x9a   : > { %s2838_s16 = scalar_lea.vmem %s3293_s19, 4096  ;;  %s3031_s15 = smov [#allocation2]  }
  0x9b   : > { %p2839_p3 = scmp.ne.s32.totalorder %s3293_s19, %s2838_s16  ;;  %s2843_s11 = sshll.u32 %s3031_s15, 4  ;;  %s2844_s11 = int_to_ptr.vmem [resolvable:$false] %s2843_s11 }
  0x9c   : > { %s2845_s26 = scalar_lea.vmem %s2844_s11, 8192  ;;  %p2846_p12 = scmp.lt.s32.totalorder %s3293_s19, %s2844_s11 }
  0x9d   : > { %p2841_p5 = pnand %p2839_p3, %p2825_p9  ;;  %p2847_p2 = scmp.lt.s32.totalorder %s2845_s26, %s2838_s16 }
  0x9f   : > { %p2842_p7 = pneg %p2841_p5  ;;  %p2848_p1 = por %p2847_p2, %p2846_p12 }
  0xa1   : > { %p2849_p13 = pnand %p2848_p1, %p2842_p7 }
  0xa3   : > { %2852 = shalt.err (!%p2849_p13)
}
  0xa4   : > { %s3032_s10 = smov 256   ;;  %s3033_s17 = smov 16  }
  0xa5   : > { %2408 = dma.hbm_to_vmem [thread:$0]  (!%p3295_p11), %s3291_s13, 4096, %s3293_s19, %s418_s14, %s3032_s10, %s3032_s10, %s3033_s17  }
  0xa6   : > { %s2116_s18 = sshll.u32 %s3284_s30, 7  ;;  %s2233_s15 = sshll.u32 %s3021_s24, 11 }
  0xa7   : > { %s3332_s26 = scalar_lea.hbm %s3871_s9, %s2233_s15  ;;  %s443_s28 = scalar_lea.vmem [#allocation11], %s2116_s18 }
  0xa8   : > { %s450_s0 = sshll.u32 %s443_s28, 4  ;;  %s440_s1 = scalar_lea.sflag [#allocation12], %s3284_s30  ;;  %s3334_s0 = int_to_ptr.vmem [resolvable:$true] %s450_s0 }
  0xa9   : > { %s2853_s3 = scalar_lea.hbm %s3332_s26, 2048  ;;  %s2858_s14 = scalar_lea.hbm %s3871_s9, 4096 }
  0xaa   : > { %p2854_p0 = scmp.ne.s32.totalorder %s3332_s26, %s2853_s3  ;;  %p2859_p6 = scmp.lt.u32.totalorder %s3332_s26, %s3871_s9 }
  0xab   : > { %p2860_p3 = scmp.lt.u32.totalorder %s2858_s14, %s2853_s3  ;;  %p2862_p7 = scmp.lt.u32.totalorder %s2853_s3, %s3332_s26 }
  0xac   : > { %p2856_p4 = pnand %p2854_p0, %p2825_p9 }
  0xad   : > { %p2861_p5 = por %p2860_p3, %p2859_p6 }
  0xae   : > { %p2857_p8 = pneg %p2856_p4 }
  0xaf   : > { %p2863_p12 = por %p2862_p7, %p2861_p5 }
  0xb1   : > { %p2864_p2 = pnand %p2863_p12, %p2857_p8 }
  0xb3   : > { %2867 = shalt.err (!%p2864_p2)
}
  0xb4   : > { %s2868_s28 = scalar_lea.vmem %s3334_s0, 2048  ;;  %s3034_s18 = smov [#allocation11]  }
  0xb5   : > { %p2869_p1 = scmp.ne.s32.totalorder %s3334_s0, %s2868_s28  ;;  %s2873_s15 = sshll.u32 %s3034_s18, 4  ;;  %s2874_s15 = int_to_ptr.vmem [resolvable:$false] %s2873_s15 }
  0xb6   : > { %s2875_s11 = scalar_lea.vmem %s2874_s15, 4096  ;;  %p2876_p4 = scmp.lt.s32.totalorder %s3334_s0, %s2874_s15 }
  0xb7   : > { %p2871_p13 = pnand %p2869_p1, %p2825_p9  ;;  %p2877_p6 = scmp.lt.s32.totalorder %s2875_s11, %s2868_s28 }
  0xb9   : > { %p2872_p0 = pneg %p2871_p13  ;;  %p2878_p3 = por %p2877_p6, %p2876_p4 }
  0xbb   : > { %p2879_p5 = pnand %p2878_p3, %p2872_p0 }
  0xbd   : > { %2882 = shalt.err (!%p2879_p5)
}
  0xbe   : > { %s3906_s3 = smov 8   ;;  %s3907_s16 = smov 128  }
  0xbf   : > { %2411 = dma.hbm_to_vmem [thread:$0]  (!%p3295_p11), %s3332_s26, 2048, %s3334_s0, %s440_s1, %s3907_s16, %s3907_s16, %s3906_s3  }
  0xc0   : > { %p3908_p9 = scmp.ne.s32.totalorder %s3897_s29, 0 }
  0xc1   : > { %s3368_s13 = sand.u32 (!%p3908_p9), 1, %s3013_s22   ;;  %p3909_p8 = scmp.ne.s32.totalorder (!%p3908_p9), %s3894_s27, 0 }
  0xc2   : > { %462 = sbr.rel (%p3908_p9) target bundleno = 1252 (0x4e4), region = 60  ;;  %s2120_s19 = sshll.u32 (!%p3908_p9), %s3368_s13, 8 }
  0xc3   : > { %s465_s8 = scalar_lea.sflag (!%p3908_p9), [#allocation3], %s3368_s13  ;;  %s3374_s14 = scalar_lea.vmem (!%p3908_p9), [#allocation2], %s2120_s19 }
  0xc9   : > { %2984 = dma.done.wait (%p3909_p8), %s465_s8, 4096  }
  0xca   : > { %2986 = vsyncadd (%p3909_p8), %s465_s8, 4294963200  ;;  %p3910_p11 = scmp.eq.s32.totalorder %s3129_s25, 0 }
  0xcc   : > { %2988 = dma.done.wait (%p3910_p11), [#allocation6], 4096   ;;  %p3911_p7 = pmov %p3910_p11 }
  0xce   : > { %2990 = vsyncadd (%p3911_p7), [#allocation6], 4294963200  ;;  %p3912_p12 = pmov %p3911_p7 }
  0xcf   : > { %p3913_p2 = pmov %p3911_p7 }
  0xd0   : > { %2992 = dma.done.wait (%p3912_p12), [#allocation9], 3072  }
  0xd1   : > { %2994 = vsyncadd (%p3913_p2), [#allocation9], 4294964224  ;;  %s3389_s0 = sshll.u32 %s3368_s13, 7  ;;  %s490_s1 = scalar_lea.sflag [#allocation12], %s3368_s13 }
  0xd2   : > { %s3393_s29 = scalar_lea.vmem [#allocation11], %s3389_s0 }
  0xd3   : > { %2996 = dma.done.wait (%p3909_p8), %s490_s1, 2048  }
  0xd4   : > { %2998 = vsyncadd (%p3909_p8), %s490_s1, 4294965248  ;;  %v2479_v0 = vld [vmem:[#allocation5 + $0x40] sm:$0xff]   ;;  %v2481_v2 = vld [vmem:[#allocation5 + $0x48] sm:$0xff]   ;;  %s3512_s17 = scalar_lea.vmem [#allocation14], %s3389_s0  ;;  %s3517_s28 = scalar_lea.vmem [#allocation16], %s3389_s0 }
  0xd5   : > { %v2480_v1 = vld [vmem:[#allocation5] sm:$0xff]   ;;  %2238 = vmatprep.subr.bf16.mxu0 %v2479_v0  ;;  %v2482_v3 = vld [vmem:[#allocation5 + $0x8] sm:$0xff]   ;;  %v2483_v4 = vld [vmem:[#allocation5 + $0x50] sm:$0xff]   ;;  %s1858_s11 = sand.u32 1, %s3129_s25   ;;  %s2236_s3 = sshll.u32 %s3129_s25, 11 }
  0xd6   : > { %2239 = vmatpush3.bf16.msra.mxu0 %v2480_v1  ;;  %v2484_v5 = vld [vmem:[#allocation5 + $0x10] sm:$0xff]   ;;  %v2485_v6 = vld [vmem:[#allocation5 + $0x58] sm:$0xff]   ;;  %v2487_v8 = vld [vmem:[#allocation5 + $0x60] sm:$0xff]   ;;  %s1894_s1 = sshll.u32 %s3512_s17, 4  ;;  %s3036_s30 = smov [#allocation14]   ;;  %s3666_s1 = int_to_ptr.vmem [resolvable:$true] %s1894_s1 }
  0xd7   : > { %2240 = vmatprep.subr.bf16.mxu0 %v2481_v2  ;;  %v2486_v7 = vld [vmem:[#allocation5 + $0x18] sm:$0xff]   ;;  %v2488_v9 = vld [vmem:[#allocation5 + $0x20] sm:$0xff]   ;;  %v2489_v10 = vld [vmem:[#allocation5 + $0x68] sm:$0xff]   ;;  %s2883_s27 = scalar_lea.vmem %s3666_s1, 2048  ;;  %s2887_s26 = sshll.u32 %s3036_s30, 4  ;;  %s2888_s26 = int_to_ptr.vmem [resolvable:$false] %s2887_s26 }
  0xd8   : > { %v556_v11 = vld [vmem:[%s3374_s14 + $0x8] sm:$0xff]  ;;  %v558_v12 = vld [vmem:[%s3374_s14 + $0x18] sm:$0xff]  ;;  %v2491_v15 = vld [vmem:[#allocation5 + $0x70] sm:$0xff]   ;;  %p2884_p1 = scmp.ne.s32.totalorder %s3666_s1, %s2883_s27  ;;  %s2889_s10 = scalar_lea.vmem %s2888_s26, 4096 }
  0xd9   : > { %v588_v13 = vpack.c.bf16 %v558_v12, %v556_v11  ;;  %v2490_v14 = vld [vmem:[#allocation5 + $0x28] sm:$0xff]   ;;  %v2492_v16 = vld [vmem:[#allocation5 + $0x30] sm:$0xff]   ;;  %v2493_v17 = vld [vmem:[#allocation5 + $0x78] sm:$0xff]   ;;  %p2890_p4 = scmp.lt.s32.totalorder %s3666_s1, %s2888_s26  ;;  %p2891_p6 = scmp.lt.s32.totalorder %s2889_s10, %s2883_s27 }
  0xda   : > { %2241 = vmatpush3.bf16.msra.mxu0 %v2482_v3  ;;  %v2494_v18 = vld [vmem:[#allocation5 + $0x38] sm:$0xff]   ;;  %v555_v19 = vld [vmem:[%s3374_s14] sm:$0xff]  ;;  %v557_v20 = vld [vmem:[%s3374_s14 + $0x10] sm:$0xff]  ;;  %p2885_p13 = pnand %p2884_p1, %p3275_p10 }
  0xdb   : > { %2242 = vmatprep.subr.bf16.mxu0 %v2483_v4  ;;  %770 = vmatprep.mubr.bf16.mxu0 %v588_v13  ;;  %v560_v21 = vld [vmem:[%s3374_s14 + $0x28] sm:$0xff]  ;;  %v562_v22 = vld [vmem:[%s3374_s14 + $0x38] sm:$0xff]  ;;  %v587_v26 = vpack.c.bf16 %v557_v20, %v555_v19  ;;  %v559_v31 = vld [vmem:[%s3374_s14 + $0x20] sm:$0xff]  ;;  %p2892_p3 = por %p2891_p6, %p2890_p4 }
  0xdc   : > { %v2495_v23 = vld [vmem:[#allocation7 + $0x4] ss:$8 sps:$4 sm:$0xff]   ;;  %v2497_v24 = vld [vmem:[#allocation7] ss:$8 sps:$4 sm:$0xff]   ;;  %v2498_v25 = vld [vmem:[#allocation7 + $0x14] ss:$8 sps:$4 sm:$0xff]   ;;  %v590_v28 = vpack.c.bf16 %v562_v22, %v560_v21  ;;  %p2886_p0 = pneg %p2885_p13 }
  0xdd   : > { %967 = vmatprep.subr.bf16.mxu1 %v2495_v23  ;;  %v2500_v27 = vld [vmem:[#allocation7 + $0x10] ss:$8 sps:$4 sm:$0xff]   ;;  %v2501_v29 = vld [vmem:[#allocation7 + $0x24] ss:$8 sps:$4 sm:$0xff]   ;;  %v2503_v30 = vld [vmem:[#allocation7 + $0x20] ss:$8 sps:$4 sm:$0xff]  }
  0xde   : > { %2243 = vmatpush3.bf16.msra.mxu0 %v2484_v5  ;;  %968 = vmatpush1.bf16.msra.mxu1 %v2497_v24  ;;  %v561_v32 = vld [vmem:[%s3374_s14 + $0x30] sm:$0xff]  ;;  %v564_v34 = vld [vmem:[%s3374_s14 + $0x48] sm:$0xff]  ;;  %v566_v35 = vld [vmem:[%s3374_s14 + $0x58] sm:$0xff]  ;;  %p2893_p5 = pnand %p2892_p3, %p2886_p0 }
  0xdf   : > { %2244 = vmatprep.subr.bf16.mxu0 %v2485_v6  ;;  %969 = vmatprep.subr.bf16.mxu1 %v2498_v25  ;;  %v2504_v33 = vld [vmem:[#allocation7 + $0x34] ss:$8 sps:$4 sm:$0xff]   ;;  %v2506_v36 = vld [vmem:[#allocation7 + $0x30] ss:$8 sps:$4 sm:$0xff]   ;;  %v2507_v37 = vld [vmem:[#allocation7 + $0x44] ss:$8 sps:$4 sm:$0xff]   ;;  %v589_v38 = vpack.c.bf16 %v561_v32, %v559_v31  ;;  %v592_v39 = vpack.c.bf16 %v566_v35, %v564_v34 }
  0xe0   : > { %v2509_v40 = vld [vmem:[#allocation7 + $0x40] ss:$8 sps:$4 sm:$0xff]   ;;  %v565_v42 = vld [vmem:[%s3374_s14 + $0x50] sm:$0xff]  ;;  %v570_v44 = vld [vmem:[%s3374_s14 + $0x78] sm:$0xff] }
  0xe1   : > { %v563_v41 = vld [vmem:[%s3374_s14 + $0x40] sm:$0xff]  ;;  %v568_v43 = vld [vmem:[%s3374_s14 + $0x68] sm:$0xff]  ;;  %v569_v48 = vld [vmem:[%s3374_s14 + $0x70] sm:$0xff] }
  0xe2   : > { %2245 = vmatpush3.bf16.msra.mxu0 %v2486_v7  ;;  %970 = vmatpush1.bf16.msra.mxu1 %v2500_v27  ;;  %v591_v45 = vpack.c.bf16 %v565_v42, %v563_v41  ;;  %v594_v46 = vpack.c.bf16 %v570_v44, %v568_v43  ;;  %v567_v47 = vld [vmem:[%s3374_s14 + $0x60] sm:$0xff]  ;;  %v572_v49 = vld [vmem:[%s3374_s14 + $0x88] sm:$0xff]  ;;  %v574_v50 = vld [vmem:[%s3374_s14 + $0x98] sm:$0xff] }
  0xe3   : > { %2246 = vmatprep.subr.bf16.mxu0 %v2487_v8  ;;  %971 = vmatprep.subr.bf16.mxu1 %v2501_v29  ;;  %v593_v51 = vpack.c.bf16 %v569_v48, %v567_v47  ;;  %v596_v52 = vpack.c.bf16 %v574_v50, %v572_v49  ;;  %v571_v53 = vld [vmem:[%s3374_s14 + $0x80] sm:$0xff]  ;;  %v573_v54 = vld [vmem:[%s3374_s14 + $0x90] sm:$0xff]  ;;  %v576_v55 = vld [vmem:[%s3374_s14 + $0xa8] sm:$0xff] }
  0xe4   : > { %v578_v56 = vld [vmem:[%s3374_s14 + $0xb8] sm:$0xff]  ;;  %v595_v57 = vpack.c.bf16 %v573_v54, %v571_v53  ;;  %v575_v59 = vld [vmem:[%s3374_s14 + $0xa0] sm:$0xff]  ;;  %v577_v60 = vld [vmem:[%s3374_s14 + $0xb0] sm:$0xff] }
  0xe5   : > { %v598_v58 = vpack.c.bf16 %v578_v56, %v576_v55  ;;  %v580_v61 = vld [vmem:[%s3374_s14 + $0xc8] sm:$0xff]  ;;  %v582_v62 = vld [vmem:[%s3374_s14 + $0xd8] sm:$0xff]  ;;  %v597_v63 = vpack.c.bf16 %v577_v60, %v575_v59  ;;  %v579_v1 = vld [vmem:[%s3374_s14 + $0xc0] sm:$0xff] }
  0xe6   : > { %2247 = vmatpush3.bf16.msra.mxu0 %v2488_v9  ;;  %972 = vmatpush1.bf16.msra.mxu1 %v2503_v30  ;;  %v600_v0 = vpack.c.bf16 %v582_v62, %v580_v61  ;;  %v581_v2 = vld [vmem:[%s3374_s14 + $0xd0] sm:$0xff]  ;;  %v584_v3 = vld [vmem:[%s3374_s14 + $0xe8] sm:$0xff]  ;;  %v586_v4 = vld [vmem:[%s3374_s14 + $0xf8] sm:$0xff] }
  0xe7   : > { %2248 = vmatprep.subr.bf16.mxu0 %v2489_v10  ;;  %973 = vmatprep.subr.bf16.mxu1 %v2504_v33  ;;  %v599_v5 = vpack.c.bf16 %v581_v2, %v579_v1  ;;  %v602_v6 = vpack.c.bf16 %v586_v4, %v584_v3  ;;  %v583_v7 = vld [vmem:[%s3374_s14 + $0xe0] sm:$0xff]  ;;  %v585_v8 = vld [vmem:[%s3374_s14 + $0xf0] sm:$0xff]  ;;  %s3914_s14 = sld [smem:[#allocation30_spill]] }
  0xe8   : > { %v601_v9 = vpack.c.bf16 %v585_v8, %v583_v7  ;;  %v2510_v10 = vld [vmem:[#allocation7 + $0x54] ss:$8 sps:$4 sm:$0xff]   ;;  %v2512_v11 = vld [vmem:[#allocation7 + $0x50] ss:$8 sps:$4 sm:$0xff]   ;;  %v2513_v12 = vld [vmem:[#allocation7 + $0x64] ss:$8 sps:$4 sm:$0xff]  }
  0xe9   : > { %v2515_v13 = vld [vmem:[#allocation7 + $0x60] ss:$8 sps:$4 sm:$0xff]   ;;  %v2521_v19 = vld [vmem:[#allocation8 + $0x10] sm:$0xff]  }
  0xea   : > { %2249 = vmatpush3.bf16.msra.mxu0 %v2490_v14  ;;  %974 = vmatpush1.bf16.msra.mxu1 %v2506_v36  ;;  %v2516_v14 = vld [vmem:[#allocation7 + $0x74] ss:$8 sps:$4 sm:$0xff]   ;;  %v3435_v21 = vld [vmem:[%s3864_s2] ss:$0 sm:$0xff] }
  0xeb   : > { %2250 = vmatprep.subr.bf16.mxu0 %v2491_v15  ;;  %975 = vmatprep.subr.bf16.mxu1 %v2507_v37  ;;  %v2518_v15 = vld [vmem:[#allocation7 + $0x70] ss:$8 sps:$4 sm:$0xff]  }
  0xed   : > { %s3663_s0 = scalar_lea.hbm %s3914_s14, %s2236_s3 }
  0xee   : > { %2251 = vmatpush3.bf16.msra.mxu0 %v2492_v16  ;;  %976 = vmatpush1.bf16.msra.mxu1 %v2509_v40  ;;  %v3035_v16 = vmov 0  }
  0xef   : > { %2252 = vmatprep.subr.bf16.mxu0 %v2493_v17  ;;  %977 = vmatprep.subr.bf16.mxu1 %v2510_v10  ;;  %v2519_v17 = vld [vmem:[#allocation8] sm:$0xff]  }
  0xf0   : > { %999 = vmatprep.mubr.bf16.mxu1 %v3035_v16 }
  0xf2   : > { %2253 = vmatpush3.bf16.msra.mxu0 %v2494_v18  ;;  %978 = vmatpush1.bf16.msra.mxu1 %v2512_v11  ;;  %v2520_v18 = vld [vmem:[#allocation8 + $0x8] sm:$0xff]  }
  0xf3   : > { %979 = vmatprep.subr.bf16.mxu1 %v2513_v12  ;;  %2318 = vmatprep.subr.bf16.mxu0 %v2519_v17 }
  0xf5   : > { %771 = vmatmul.mubr.bf16.vlgmr.msra.gmra.mrb[0].mxu0 %v587_v26 }
  0xf6   : > { %778 = vmatprep.mubr.bf16.mxu0 %v590_v28  ;;  %980 = vmatpush1.bf16.msra.mxu1 %v2515_v13 }
  0xf7   : > { %981 = vmatprep.subr.bf16.mxu1 %v2516_v14  ;;  %2319 = vmatpush3.bf16.msra.mxu0 %v2519_v17 }
  0xf8   : > { %2320 = vmatprep.subr.bf16.mxu0 %v2520_v18 }
  0xfa   : > { %982 = vmatpush1.bf16.msra.mxu1 %v2518_v15 }
  0xfb   : > { %2321 = vmatpush3.bf16.msra.mxu0 %v2520_v18 }
  0xfc   : > { %2322 = vmatprep.subr.bf16.mxu0 %v2521_v19 }
  0xfd   : > { %779 = vmatmul.mubr.bf16.gmra.mrb[4].mxu0 %v589_v38 }
  0xfe   : > { %786 = vmatprep.mubr.bf16.mxu0 %v592_v39 }
  0xff   : > { %2323 = vmatpush3.bf16.msra.mxu0 %v2521_v19 }
 0x105   : > { %787 = vmatmul.mubr.bf16.gmra.mrb[8].mxu0 %v591_v45 }
 0x106   : > { %794 = vmatprep.mubr.bf16.mxu0 %v594_v46 }
 0x10d   : > { %795 = vmatmul.mubr.bf16.gmra.mrb[12].mxu0 %v593_v51 }
 0x10e   : > { %802 = vmatprep.mubr.bf16.mxu0 %v596_v52 }
 0x115   : > { %803 = vmatmul.mubr.bf16.gmra.mrb[16].mxu0 %v595_v57 }
 0x116   : > { %810 = vmatprep.mubr.bf16.mxu0 %v598_v58 }
 0x11d   : > { %811 = vmatmul.mubr.bf16.gmra.mrb[20].mxu0 %v597_v63 }
 0x11e   : > { %818 = vmatprep.mubr.bf16.mxu0 %v600_v0 }
 0x125   : > { %819 = vmatmul.mubr.bf16.gmra.mrb[24].mxu0 %v599_v5 }
 0x126   : > { %826 = vmatprep.mubr.bf16.mxu0 %v602_v6 }
 0x12d   : > { %827 = vmatmul.mubr.bf16.gmra.mrb[28].mxu0 %v601_v9 }
 0x1c8   : > { %v2254_v20 = vpop.f32.mrb[0].mxu0 }
 0x1c9   : > { %v2255_v22 = vpop.f32.mrb[1].mxu0 }
 0x1ca   : > { %v2256_v23 = vadd.f32 %v2255_v22, %v2254_v20  ;;  %v2257_v24 = vpop.f32.mrb[2].mxu0 }
 0x1cb   : > { %v2258_v25 = vpop.f32.mrb[3].mxu0 }
 0x1cc   : > { %v773_v26 = vadd.f32 %v2256_v23, %v3435_v21  ;;  %v2259_v27 = vadd.f32 %v2258_v25, %v2257_v24 }
 0x1ce   : > { %v776_v28 = vadd.f32 %v2259_v27, %v3435_v21  ;;  %v835_v29 = vmax.f32 %v773_v26, 0.0 }
 0x1d0   : > { %v836_v30 = vmax.f32 %v776_v28, 0.0  ;;  %v2260_v31 = vpop.f32.mrb[4].mxu0 }
 0x1d1   : > { %v2261_v32 = vpop.f32.mrb[5].mxu0 }
 0x1d2   : > { %v2262_v33 = vadd.f32 %v2261_v32, %v2260_v31  ;;  %v2263_v34 = vpop.f32.mrb[6].mxu0  ;;  %v851_v35 = vpack.c.bf16 %v836_v30, %v835_v29 }
 0x1d3   : > { %v2264_v36 = vpop.f32.mrb[7].mxu0 }
 0x1d4   : > { %v781_v37 = vadd.f32 %v2262_v33, %v3435_v21  ;;  %v2265_v38 = vadd.f32 %v2264_v36, %v2263_v34  ;;  %1000 = vmatmul.mubr.bf16.vlgmr.msra.gmra.mrb[0].mxu1 %v851_v35 }
 0x1d5   : > { %1009 = vmatprep.mubr.bf16.mxu1 %v3035_v16 }
 0x1d6   : > { %v784_v39 = vadd.f32 %v2265_v38, %v3435_v21  ;;  %v837_v40 = vmax.f32 %v781_v37, 0.0 }
 0x1d8   : > { %v838_v41 = vmax.f32 %v784_v39, 0.0  ;;  %v2266_v42 = vpop.f32.mrb[8].mxu0 }
 0x1d9   : > { %v2267_v43 = vpop.f32.mrb[9].mxu0 }
 0x1da   : > { %v2268_v44 = vadd.f32 %v2267_v43, %v2266_v42  ;;  %v2269_v45 = vpop.f32.mrb[10].mxu0  ;;  %v852_v46 = vpack.c.bf16 %v838_v41, %v837_v40 }
 0x1db   : > { %v2270_v47 = vpop.f32.mrb[11].mxu0 }
 0x1dc   : > { %v789_v48 = vadd.f32 %v2268_v44, %v3435_v21  ;;  %v2271_v49 = vadd.f32 %v2270_v47, %v2269_v45  ;;  %1010 = vmatmul.mubr.bf16.gmra.mrb[4].mxu1 %v852_v46  ;;  %v2522_v47 = vld [vmem:[#allocation8 + $0x18] sm:$0xff]  }
 0x1dd   : > { %1019 = vmatprep.mubr.bf16.mxu1 %v3035_v16  ;;  %2324 = vmatprep.subr.bf16.mxu0 %v2522_v47 }
 0x1de   : > { %v792_v50 = vadd.f32 %v2271_v49, %v3435_v21  ;;  %v839_v51 = vmax.f32 %v789_v48, 0.0  ;;  %2325 = vmatpush3.bf16.msra.mxu0 %v2522_v47  ;;  %v2523_v48 = vld [vmem:[#allocation8 + $0x20] sm:$0xff]   ;;  %v2524_v49 = vld [vmem:[#allocation8 + $0x28] sm:$0xff]  }
 0x1df   : > { %2326 = vmatprep.subr.bf16.mxu0 %v2523_v48 }
 0x1e0   : > { %v840_v52 = vmax.f32 %v792_v50, 0.0  ;;  %v2272_v53 = vpop.f32.mrb[12].mxu0  ;;  %v2525_v50 = vld [vmem:[#allocation8 + $0x30] sm:$0xff]  }
 0x1e1   : > { %v2273_v54 = vpop.f32.mrb[13].mxu0 }
 0x1e2   : > { %v2274_v55 = vadd.f32 %v2273_v54, %v2272_v53  ;;  %v2275_v56 = vpop.f32.mrb[14].mxu0  ;;  %v853_v57 = vpack.c.bf16 %v840_v52, %v839_v51  ;;  %2327 = vmatpush3.bf16.msra.mxu0 %v2523_v48  ;;  %v2526_v51 = vld [vmem:[#allocation8 + $0x38] sm:$0xff]   ;;  %v3461_v52 = vld [vmem:[#allocation10] ss:$8 sps:$4 sm:$0xff]  }
 0x1e3   : > { %v2276_v58 = vpop.f32.mrb[15].mxu0  ;;  %2328 = vmatprep.subr.bf16.mxu0 %v2524_v49  ;;  %v3463_v53 = vld [vmem:[#allocation10 + $0x14] ss:$8 sps:$4 sm:$0xff]   ;;  %v3467_v54 = vld [vmem:[#allocation10 + $0x10] ss:$8 sps:$4 sm:$0xff]  }
 0x1e4   : > { %v797_v59 = vadd.f32 %v2274_v55, %v3435_v21  ;;  %v2277_v60 = vadd.f32 %v2276_v58, %v2275_v56  ;;  %1020 = vmatmul.mubr.bf16.gmra.mrb[8].mxu1 %v853_v57  ;;  %v3469_v55 = vld [vmem:[#allocation10 + $0x24] ss:$8 sps:$4 sm:$0xff]   ;;  %v3473_v56 = vld [vmem:[#allocation10 + $0x20] ss:$8 sps:$4 sm:$0xff]   ;;  %v3475_v57 = vld [vmem:[#allocation10 + $0x34] ss:$8 sps:$4 sm:$0xff]  }
 0x1e5   : > { %1029 = vmatprep.mubr.bf16.mxu1 %v3035_v16  ;;  %v3479_v58 = vld [vmem:[#allocation10 + $0x30] ss:$8 sps:$4 sm:$0xff]  }
 0x1e6   : > { %v800_v61 = vadd.f32 %v2277_v60, %v3435_v21  ;;  %v841_v62 = vmax.f32 %v797_v59, 0.0  ;;  %2329 = vmatpush3.bf16.msra.mxu0 %v2524_v49  ;;  %v3481_v59 = vld [vmem:[#allocation10 + $0x44] ss:$8 sps:$4 sm:$0xff]   ;;  %v3485_v60 = vld [vmem:[#allocation10 + $0x40] ss:$8 sps:$4 sm:$0xff]  }
 0x1e7   : > { %2330 = vmatprep.subr.bf16.mxu0 %v2525_v50 }
 0x1e8   : > { %v842_v63 = vmax.f32 %v800_v61, 0.0  ;;  %v2278_v0 = vpop.f32.mrb[16].mxu0  ;;  %v3487_v61 = vld [vmem:[#allocation10 + $0x54] ss:$8 sps:$4 sm:$0xff]  }
 0x1e9   : > { %v2279_v1 = vpop.f32.mrb[17].mxu0 }
 0x1ea   : > { %v2280_v2 = vadd.f32 %v2279_v1, %v2278_v0  ;;  %v2281_v3 = vpop.f32.mrb[18].mxu0  ;;  %v854_v4 = vpack.c.bf16 %v842_v63, %v841_v62  ;;  %2331 = vmatpush3.bf16.msra.mxu0 %v2525_v50  ;;  %v3491_v62 = vld [vmem:[#allocation10 + $0x50] ss:$8 sps:$4 sm:$0xff]   ;;  %v877_v63 = vlaneseq }
 0x1eb   : > { %v2282_v5 = vpop.f32.mrb[19].mxu0  ;;  %2332 = vmatprep.subr.bf16.mxu0 %v2526_v51 }
 0x1ec   : > { %v805_v6 = vadd.f32 %v2280_v2, %v3435_v21  ;;  %v2283_v7 = vadd.f32 %v2282_v5, %v2281_v3  ;;  %1030 = vmatmul.mubr.bf16.gmra.mrb[12].mxu1 %v854_v4  ;;  %v3494_v0 = vshrl.u32 %v877_v63, 7  ;;  %v875_v2 = vld [vmem:[%s3866_s4] sm:$0x3] }
 0x1ed   : > { %1039 = vmatprep.mubr.bf16.mxu1 %v3035_v16 }
 0x1ee   : > { %v808_v8 = vadd.f32 %v2283_v7, %v3435_v21  ;;  %v843_v9 = vmax.f32 %v805_v6, 0.0  ;;  %2333 = vmatpush3.bf16.msra.mxu0 %v2526_v51  ;;  %v879_v1 = vsub.s32 0, %v3494_v0  ;;  %v883_v3 = vsub.s32 1, %v3494_v0  ;;  %v1130_v51 = vld [vmem:[%s3393_s29 + $0x10] sm:$0xff] }
 0x1f0   : > { %v844_v10 = vmax.f32 %v808_v8, 0.0  ;;  %v2284_v11 = vpop.f32.mrb[20].mxu0  ;;  %v3503_v4 = vrot.slane %v875_v2, %v879_v1  ;;  %v3507_v5 = vrot.slane %v875_v2, %v883_v3 }
 0x1f1   : > { %v2285_v12 = vpop.f32.mrb[21].mxu0 }
 0x1f2   : > { %v2286_v13 = vadd.f32 %v2285_v12, %v2284_v11  ;;  %v2287_v14 = vpop.f32.mrb[22].mxu0  ;;  %v855_v15 = vpack.c.bf16 %v844_v10, %v843_v9 }
 0x1f3   : > { %v2288_v17 = vpop.f32.mrb[23].mxu0 }
 0x1f4   : > { %v813_v18 = vadd.f32 %v2286_v13, %v3435_v21  ;;  %v2289_v19 = vadd.f32 %v2288_v17, %v2287_v14  ;;  %1040 = vmatmul.mubr.bf16.gmra.mrb[16].mxu1 %v855_v15 }
 0x1f5   : > { %1049 = vmatprep.mubr.bf16.mxu1 %v3035_v16 }
 0x1f6   : > { %v816_v20 = vadd.f32 %v2289_v19, %v3435_v21  ;;  %v845_v22 = vmax.f32 %v813_v18, 0.0 }
 0x1f8   : > { %v846_v23 = vmax.f32 %v816_v20, 0.0  ;;  %v2290_v24 = vpop.f32.mrb[24].mxu0 }
 0x1f9   : > { %v2291_v25 = vpop.f32.mrb[25].mxu0 }
 0x1fa   : > { %v2292_v26 = vadd.f32 %v2291_v25, %v2290_v24  ;;  %v2293_v27 = vpop.f32.mrb[26].mxu0  ;;  %v856_v28 = vpack.c.bf16 %v846_v23, %v845_v22 }
 0x1fb   : > { %v2294_v29 = vpop.f32.mrb[27].mxu0 }
 0x1fc   : > { %v821_v30 = vadd.f32 %v2292_v26, %v3435_v21  ;;  %v2295_v31 = vadd.f32 %v2294_v29, %v2293_v27  ;;  %1050 = vmatmul.mubr.bf16.gmra.mrb[20].mxu1 %v856_v28 }
 0x1fd   : > { %1059 = vmatprep.mubr.bf16.mxu1 %v3035_v16 }
 0x1fe   : > { %v824_v32 = vadd.f32 %v2295_v31, %v3435_v21  ;;  %v847_v33 = vmax.f32 %v821_v30, 0.0 }
 0x200   : > { %v848_v34 = vmax.f32 %v824_v32, 0.0  ;;  %v2296_v35 = vpop.f32.mrb[28].mxu0 }
 0x201   : > { %v2297_v36 = vpop.f32.mrb[29].mxu0 }
 0x202   : > { %v2298_v37 = vadd.f32 %v2297_v36, %v2296_v35  ;;  %v2299_v38 = vpop.f32.mrb[30].mxu0  ;;  %v857_v39 = vpack.c.bf16 %v848_v34, %v847_v33  ;;  %v1128_v33 = vld [vmem:[%s3393_s29] sm:$0xff] }
 0x203   : > { %v2300_v40 = vpop.f32.mrb[31].mxu0 }
 0x204   : > { %v829_v41 = vadd.f32 %v2298_v37, %v3435_v21  ;;  %v2301_v42 = vadd.f32 %v2300_v40, %v2299_v38  ;;  %1060 = vmatmul.mubr.bf16.gmra.mrb[24].mxu1 %v857_v39  ;;  %v1129_v39 = vld [vmem:[%s3393_s29 + $0x8] sm:$0xff] }
 0x205   : > { %1069 = vmatprep.mubr.bf16.mxu1 %v3035_v16 }
 0x206   : > { %v832_v43 = vadd.f32 %v2301_v42, %v3435_v21  ;;  %v849_v44 = vmax.f32 %v829_v41, 0.0  ;;  %v2529_v21 = vld [vmem:[#allocation10 + $0x4] ss:$8 sps:$4 sm:$0xff]  }
 0x207   : > { %2350 = vmatprep.subr.bf16.mxu1 %v2529_v21  ;;  %1484 = vmatprep.subr.bf16.mxu0 %v2529_v21 }
 0x208   : > { %v850_v45 = vmax.f32 %v832_v43, 0.0  ;;  %2358 = vmatpush1.bf16.msra.mxu1 %v3461_v52 }
 0x209   : > { %2351 = vmatprep.subr.bf16.mxu1 %v3463_v53 }
 0x20a   : > { %v858_v46 = vpack.c.bf16 %v850_v45, %v849_v44 }
 0x20c   : > { %1070 = vmatmul.mubr.bf16.gmra.mrb[28].mxu1 %v858_v46 }
 0x20d   : > { %1536 = vmatprep.mubr.bf16.mxu1 %v3035_v16  ;;  %2359 = vmatpush1.bf16.msra.mxu1 %v3467_v54 }
 0x20e   : > { %2352 = vmatprep.subr.bf16.mxu1 %v3469_v55 }
 0x211   : > { %2360 = vmatpush1.bf16.msra.mxu1 %v3473_v56 }
 0x212   : > { %2353 = vmatprep.subr.bf16.mxu1 %v3475_v57 }
 0x215   : > { %2361 = vmatpush1.bf16.msra.mxu1 %v3479_v58 }
 0x216   : > { %2354 = vmatprep.subr.bf16.mxu1 %v3481_v59 }
 0x219   : > { %2362 = vmatpush1.bf16.msra.mxu1 %v3485_v60 }
 0x21a   : > { %2355 = vmatprep.subr.bf16.mxu1 %v3487_v61 }
 0x21d   : > { %2363 = vmatpush1.bf16.msra.mxu1 %v3491_v62 }
 0x2a7   : > { %v1001_v6 = vpop.f32.mrb[0].mxu1 }
 0x2a8   : > { %v1002_v7 = vadd.f32 %v1001_v6, %v3503_v4  ;;  %v1003_v8 = vpop.f32.mrb[1].mxu1 }
 0x2a9   : > { %v1004_v9 = vadd.f32 %v1003_v8, %v3507_v5  ;;  %v1005_v10 = vpop.f32.mrb[2].mxu1 }
 0x2aa   : > { %1821 = vst [vmem:[%s3512_s17] sm:$0xff] %v1002_v7  ;;  %v1006_v11 = vadd.f32 %v1005_v10, %v3503_v4  ;;  %v1007_v12 = vpop.f32.mrb[3].mxu1  ;;  %v1131_v10 = vld [vmem:[%s3393_s29 + $0x18] sm:$0xff] }
 0x2ab   : > { %v1080_v13 = vmul.f32 0.5, %v1004_v9  ;;  %1837 = vst [vmem:[%s3517_s28] sm:$0xff] %v1004_v9  ;;  %v1008_v14 = vadd.f32 %v1007_v12, %v3507_v5 }
 0x2ac   : > { %1822 = vst [vmem:[%s3512_s17 + $0x8] sm:$0xff] %v1006_v11 }
 0x2ad   : > { %v1096_v15 = vmul.f32 1.442695, %v1080_v13  ;;  %v1081_v17 = vmul.f32 0.5, %v1008_v14  ;;  %1838 = vst [vmem:[%s3517_s28 + $0x8] sm:$0xff] %v1008_v14 }
 0x2af   : > { %2551 = vpow2.f32 %v1096_v15  ;;  %v1098_v18 = vmul.f32 1.442695, %v1081_v17  ;;  %v1011_v19 = vpop.f32.mrb[4].mxu1 }
 0x2b0   : > { %v3524_v20 = vadd.f32 %v1011_v19, %v3503_v4  ;;  %v1013_v22 = vpop.f32.mrb[5].mxu1 }
 0x2b1   : > { %2553 = vpow2.f32 %v1098_v18  ;;  %v1014_v23 = vadd.f32 %v1013_v22, %v3507_v5  ;;  %v1015_v24 = vpop.f32.mrb[6].mxu1 }
 0x2b2   : > { %1823 = vst [vmem:[%s3512_s17 + $0x10] sm:$0xff] %v3524_v20  ;;  %v1016_v25 = vadd.f32 %v1015_v24, %v3503_v4  ;;  %v1017_v26 = vpop.f32.mrb[7].mxu1 }
 0x2b3   : > { %v1082_v27 = vmul.f32 0.5, %v1014_v23  ;;  %1839 = vst [vmem:[%s3517_s28 + $0x10] sm:$0xff] %v1014_v23  ;;  %v1018_v28 = vadd.f32 %v1017_v26, %v3507_v5 }
 0x2b4   : > { %1824 = vst [vmem:[%s3512_s17 + $0x18] sm:$0xff] %v1016_v25 }
 0x2b5   : > { %v1100_v29 = vmul.f32 1.442695, %v1082_v27  ;;  %v1083_v30 = vmul.f32 0.5, %v1018_v28  ;;  %1840 = vst [vmem:[%s3517_s28 + $0x18] sm:$0xff] %v1018_v28 }
 0x2b7   : > { %2555 = vpow2.f32 %v1100_v29  ;;  %v1102_v31 = vmul.f32 1.442695, %v1083_v30  ;;  %v1021_v32 = vpop.f32.mrb[8].mxu1  ;;  %v1132_v29 = vld [vmem:[%s3393_s29 + $0x20] sm:$0xff] }
 0x2b8   : > { %v3536_v34 = vadd.f32 %v1021_v32, %v3503_v4  ;;  %v1023_v35 = vpop.f32.mrb[9].mxu1 }
 0x2b9   : > { %v2552_v36 = vpop.eup %2551  ;;  %2557 = vpow2.f32 %v1102_v31  ;;  %v1024_v37 = vadd.f32 %v1023_v35, %v3507_v5  ;;  %v1025_v38 = vpop.f32.mrb[10].mxu1 }
 0x2ba   : > { %1825 = vst [vmem:[%s3512_s17 + $0x20] sm:$0xff] %v3536_v34  ;;  %v3543_v40 = vadd.f32 %v1025_v38, %v3503_v4  ;;  %v1027_v41 = vpop.f32.mrb[11].mxu1  ;;  %v1144_v42 = vmul.f32 %v2552_v36, %v1128_v33  ;;  %v1133_v36 = vld [vmem:[%s3393_s29 + $0x28] sm:$0xff] }
 0x2bb   : > { %v2554_v43 = vpop.eup %2553  ;;  %v1084_v44 = vmul.f32 0.5, %v1024_v37  ;;  %1841 = vst [vmem:[%s3517_s28 + $0x20] sm:$0xff] %v1024_v37  ;;  %v1028_v45 = vadd.f32 %v1027_v41, %v3507_v5 }
 0x2bc   : > { %1826 = vst [vmem:[%s3512_s17 + $0x28] sm:$0xff] %v3543_v40  ;;  %v1145_v46 = vmul.f32 %v2554_v43, %v1129_v39  ;;  %v1160_v47 = vadd.f32 %v1144_v42, %v1002_v7 }
 0x2bd   : > { %v1104_v48 = vmul.f32 1.442695, %v1084_v44  ;;  %v1085_v49 = vmul.f32 0.5, %v1028_v45  ;;  %1842 = vst [vmem:[%s3517_s28 + $0x28] sm:$0xff] %v1028_v45 }
 0x2be   : > { %v1161_v50 = vadd.f32 %v1145_v46, %v1006_v11 }
 0x2bf   : > { %2559 = vpow2.f32 %v1104_v48  ;;  %v1106_v21 = vmul.f32 1.442695, %v1085_v49  ;;  %v1031_v63 = vpop.f32.mrb[12].mxu1 }
 0x2c0   : > { %v3552_v2 = vadd.f32 %v1031_v63, %v3503_v4  ;;  %v1033_v6 = vpop.f32.mrb[13].mxu1  ;;  %v1176_v8 = vpack.c.bf16 %v1161_v50, %v1160_v47  ;;  %v1134_v50 = vld [vmem:[%s3393_s29 + $0x30] sm:$0xff]  ;;  %v1135_v63 = vld [vmem:[%s3393_s29 + $0x38] sm:$0xff] }
 0x2c1   : > { %v2556_v9 = vpop.eup %2555  ;;  %2561 = vpow2.f32 %v1106_v21  ;;  %v1034_v7 = vadd.f32 %v1033_v6, %v3507_v5  ;;  %v1035_v12 = vpop.f32.mrb[14].mxu1 }
 0x2c2   : > { %v1146_v13 = vmul.f32 %v2556_v9, %v1130_v51  ;;  %1827 = vst [vmem:[%s3512_s17 + $0x30] sm:$0xff] %v3552_v2  ;;  %v3559_v11 = vadd.f32 %v1035_v12, %v3503_v4  ;;  %v1037_v14 = vpop.f32.mrb[15].mxu1  ;;  %2334 = vmatprep.mubr.bf16.mxu0 %v1176_v8 }
 0x2c3   : > { %v2558_v15 = vpop.eup %2557  ;;  %v1086_v17 = vmul.f32 0.5, %v1034_v7  ;;  %1843 = vst [vmem:[%s3517_s28 + $0x30] sm:$0xff] %v1034_v7  ;;  %v1038_v18 = vadd.f32 %v1037_v14, %v3507_v5 }
 0x2c4   : > { %v1147_v19 = vmul.f32 %v2558_v15, %v1131_v10  ;;  %1828 = vst [vmem:[%s3512_s17 + $0x38] sm:$0xff] %v3559_v11  ;;  %v1162_v22 = vadd.f32 %v1146_v13, %v3524_v20 }
 0x2c5   : > { %v1108_v23 = vmul.f32 1.442695, %v1086_v17  ;;  %v1087_v24 = vmul.f32 0.5, %v1038_v18  ;;  %1844 = vst [vmem:[%s3517_s28 + $0x38] sm:$0xff] %v1038_v18 }
 0x2c6   : > { %v1163_v26 = vadd.f32 %v1147_v19, %v1016_v25  ;;  %v1136_v19 = vld [vmem:[%s3393_s29 + $0x40] sm:$0xff] }
 0x2c7   : > { %2563 = vpow2.f32 %v1108_v23  ;;  %v1110_v27 = vmul.f32 1.442695, %v1087_v24  ;;  %v1041_v28 = vpop.f32.mrb[16].mxu1  ;;  %v1137_v24 = vld [vmem:[%s3393_s29 + $0x48] sm:$0xff] }
 0x2c8   : > { %v3569_v30 = vadd.f32 %v1041_v28, %v3503_v4  ;;  %v1043_v31 = vpop.f32.mrb[17].mxu1  ;;  %v1177_v32 = vpack.c.bf16 %v1163_v26, %v1162_v22 }
 0x2c9   : > { %v2560_v33 = vpop.eup %2559  ;;  %2565 = vpow2.f32 %v1110_v27  ;;  %v1044_v20 = vadd.f32 %v1043_v31, %v3507_v5  ;;  %v1045_v35 = vpop.f32.mrb[18].mxu1 }
 0x2ca   : > { %1829 = vst [vmem:[%s3512_s17 + $0x40] sm:$0xff] %v3569_v30  ;;  %v3576_v25 = vadd.f32 %v1045_v35, %v3503_v4  ;;  %v1047_v37 = vpop.f32.mrb[19].mxu1  ;;  %2335 = vmatmul.mubr.bf16.vlgmr.msra.gmra.mrb[32].mxu0 %v1177_v32  ;;  %v1148_v38 = vmul.f32 %v2560_v33, %v1132_v29 }
 0x2cb   : > { %v2562_v39 = vpop.eup %2561  ;;  %v1088_v41 = vmul.f32 0.5, %v1044_v20  ;;  %1845 = vst [vmem:[%s3517_s28 + $0x40] sm:$0xff] %v1044_v20  ;;  %v1048_v42 = vadd.f32 %v1047_v37, %v3507_v5  ;;  %1485 = vmatpush1.bf16.msra.mxu0 %v3461_v52 }
 0x2cc   : > { %1830 = vst [vmem:[%s3512_s17 + $0x48] sm:$0xff] %v3576_v25  ;;  %v1149_v43 = vmul.f32 %v2562_v39, %v1133_v36  ;;  %v1164_v44 = vadd.f32 %v1148_v38, %v3536_v34  ;;  %1486 = vmatprep.subr.bf16.mxu0 %v3463_v53  ;;  %v1138_v38 = vld [vmem:[%s3393_s29 + $0x50] sm:$0xff] }
 0x2cd   : > { %v1112_v45 = vmul.f32 1.442695, %v1088_v41  ;;  %v1089_v46 = vmul.f32 0.5, %v1048_v42  ;;  %1846 = vst [vmem:[%s3517_s28 + $0x48] sm:$0xff] %v1048_v42 }
 0x2ce   : > { %v1165_v47 = vadd.f32 %v1149_v43, %v3543_v40  ;;  %v1139_v43 = vld [vmem:[%s3393_s29 + $0x58] sm:$0xff] }
 0x2cf   : > { %2567 = vpow2.f32 %v1112_v45  ;;  %v1114_v48 = vmul.f32 1.442695, %v1089_v46  ;;  %v1051_v49 = vpop.f32.mrb[20].mxu1  ;;  %1487 = vmatpush1.bf16.msra.mxu0 %v3467_v54 }
 0x2d0   : > { %v3590_v52 = vadd.f32 %v1051_v49, %v3503_v4  ;;  %v1053_v34 = vpop.f32.mrb[21].mxu1  ;;  %v1178_v51 = vpack.c.bf16 %v1165_v47, %v1164_v44  ;;  %1488 = vmatprep.subr.bf16.mxu0 %v3469_v55 }
 0x2d1   : > { %v2564_v53 = vpop.eup %2563  ;;  %2569 = vpow2.f32 %v1114_v48  ;;  %v1054_v21 = vadd.f32 %v1053_v34, %v3507_v5  ;;  %v1055_v40 = vpop.f32.mrb[22].mxu1 }
 0x2d2   : > { %1831 = vst [vmem:[%s3512_s17 + $0x50] sm:$0xff] %v3590_v52  ;;  %v3598_v54 = vadd.f32 %v1055_v40, %v3503_v4  ;;  %v1057_v6 = vpop.f32.mrb[23].mxu1  ;;  %2338 = vmatprep.mubr.bf16.mxu0 %v1178_v51  ;;  %v1150_v8 = vmul.f32 %v2564_v53, %v1134_v50  ;;  %v1140_v53 = vld [vmem:[%s3393_s29 + $0x60] sm:$0xff] }
 0x2d3   : > { %v2566_v9 = vpop.eup %2565  ;;  %v1090_v10 = vmul.f32 0.5, %v1054_v21  ;;  %1847 = vst [vmem:[%s3517_s28 + $0x50] sm:$0xff] %v1054_v21  ;;  %v1058_v55 = vadd.f32 %v1057_v6, %v3507_v5  ;;  %1489 = vmatpush1.bf16.msra.mxu0 %v3473_v56 }
 0x2d4   : > { %1832 = vst [vmem:[%s3512_s17 + $0x58] sm:$0xff] %v3598_v54  ;;  %v1151_v7 = vmul.f32 %v2566_v9, %v1135_v63  ;;  %v1166_v12 = vadd.f32 %v1150_v8, %v3552_v2  ;;  %1490 = vmatprep.subr.bf16.mxu0 %v3475_v57  ;;  %v1141_v63 = vld [vmem:[%s3393_s29 + $0x68] sm:$0xff] }
 0x2d5   : > { %v1116_v13 = vmul.f32 1.442695, %v1090_v10  ;;  %v1091_v14 = vmul.f32 0.5, %v1058_v55  ;;  %1848 = vst [vmem:[%s3517_s28 + $0x58] sm:$0xff] %v1058_v55  ;;  %v1142_v10 = vld [vmem:[%s3393_s29 + $0x70] sm:$0xff] }
 0x2d6   : > { %v1167_v15 = vadd.f32 %v1151_v7, %v3559_v11 }
 0x2d7   : > { %2571 = vpow2.f32 %v1116_v13  ;;  %v1118_v17 = vmul.f32 1.442695, %v1091_v14  ;;  %v1061_v18 = vpop.f32.mrb[24].mxu1  ;;  %1491 = vmatpush1.bf16.msra.mxu0 %v3479_v58 }
 0x2d8   : > { %v3612_v56 = vadd.f32 %v1061_v18, %v3503_v4  ;;  %v1063_v2 = vpop.f32.mrb[25].mxu1  ;;  %v1179_v22 = vpack.c.bf16 %v1167_v15, %v1166_v12  ;;  %1492 = vmatprep.subr.bf16.mxu0 %v3481_v59  ;;  %v1143_v12 = vld [vmem:[%s3393_s29 + $0x78] sm:$0xff]  ;;  %s3668_s29 = scalar_lea.sflag [#allocation15], %s1858_s11 }
 0x2d9   : > { %v2568_v57 = vpop.eup %2567  ;;  %2573 = vpow2.f32 %v1118_v17  ;;  %v1064_v23 = vadd.f32 %v1063_v2, %v3507_v5  ;;  %v1065_v11 = vpop.f32.mrb[26].mxu1  ;;  %v2545_v2 = vld [vmem:[#allocation10 + $0x60] ss:$8 sps:$4 sm:$0xff]  }
 0x2da   : > { %1833 = vst [vmem:[%s3512_s17 + $0x60] sm:$0xff] %v3612_v56  ;;  %v1066_v58 = vadd.f32 %v1065_v11, %v3503_v4  ;;  %v1067_v26 = vpop.f32.mrb[27].mxu1  ;;  %2339 = vmatmul.mubr.bf16.gmra.mrb[36].mxu0 %v1179_v22  ;;  %v1152_v27 = vmul.f32 %v2568_v57, %v1136_v19  ;;  %v2547_v19 = vld [vmem:[#allocation10 + $0x64] ss:$8 sps:$4 sm:$0xff]   ;;  %v2548_v22 = vld [vmem:[#allocation10 + $0x70] ss:$8 sps:$4 sm:$0xff]  }
 0x2db   : > { %v2570_v28 = vpop.eup %2569  ;;  %v1092_v29 = vmul.f32 0.5, %v1064_v23  ;;  %1849 = vst [vmem:[%s3517_s28 + $0x60] sm:$0xff] %v1064_v23  ;;  %v1068_v59 = vadd.f32 %v1067_v26, %v3507_v5  ;;  %1493 = vmatpush1.bf16.msra.mxu0 %v3485_v60  ;;  %2356 = vmatprep.subr.bf16.mxu1 %v2547_v19  ;;  %v2162_v57 = vld [vmem:[%s3868_s6] ss:$0 sm:$0xff] }
 0x2dc   : > { %1834 = vst [vmem:[%s3512_s17 + $0x68] sm:$0xff] %v1066_v58  ;;  %v1153_v31 = vmul.f32 %v2570_v28, %v1137_v24  ;;  %v1168_v32 = vadd.f32 %v1152_v27, %v3569_v30  ;;  %1494 = vmatprep.subr.bf16.mxu0 %v3487_v61  ;;  %2364 = vmatpush1.bf16.msra.mxu1 %v2545_v2 }
 0x2dd   : > { %v1120_v33 = vmul.f32 1.442695, %v1092_v29  ;;  %v1093_v20 = vmul.f32 0.5, %v1068_v59  ;;  %1850 = vst [vmem:[%s3517_s28 + $0x68] sm:$0xff] %v1068_v59 }
 0x2de   : > { %v1169_v35 = vadd.f32 %v1153_v31, %v3576_v25 }
 0x2df   : > { %2575 = vpow2.f32 %v1120_v33  ;;  %v1122_v36 = vmul.f32 1.442695, %v1093_v20  ;;  %v1071_v37 = vpop.f32.mrb[28].mxu1  ;;  %1495 = vmatpush1.bf16.msra.mxu0 %v3491_v62 }
 0x2e0   : > { %v1072_v60 = vadd.f32 %v1071_v37, %v3503_v4  ;;  %v1073_v39 = vpop.f32.mrb[29].mxu1  ;;  %v1180_v30 = vpack.c.bf16 %v1169_v35, %v1168_v32  ;;  %1496 = vmatprep.subr.bf16.mxu0 %v2547_v19 }
 0x2e1   : > { %v2572_v61 = vpop.eup %2571  ;;  %2577 = vpow2.f32 %v1122_v36  ;;  %v1074_v41 = vadd.f32 %v1073_v39, %v3507_v5  ;;  %v1075_v42 = vpop.f32.mrb[30].mxu1 }
 0x2e2   : > { %1835 = vst [vmem:[%s3512_s17 + $0x70] sm:$0xff] %v1072_v60  ;;  %v1076_v25 = vadd.f32 %v1075_v42, %v3503_v4  ;;  %v1077_v44 = vpop.f32.mrb[31].mxu1  ;;  %2342 = vmatprep.mubr.bf16.mxu0 %v1180_v30  ;;  %v1154_v62 = vmul.f32 %v2572_v61, %v1138_v38 }
 0x2e3   : > { %v2574_v45 = vpop.eup %2573  ;;  %v1094_v46 = vmul.f32 0.5, %v1074_v41  ;;  %1851 = vst [vmem:[%s3517_s28 + $0x70] sm:$0xff] %v1074_v41  ;;  %v1078_v47 = vadd.f32 %v1077_v44, %v3507_v5  ;;  %1497 = vmatpush1.bf16.msra.mxu0 %v2545_v2 }
 0x2e4   : > { %1836 = vst [vmem:[%s3512_s17 + $0x78] sm:$0xff] %v1076_v25  ;;  %v1155_v48 = vmul.f32 %v2574_v45, %v1139_v43  ;;  %v1170_v49 = vadd.f32 %v1154_v62, %v3590_v52 }
 0x2e5   : > { %v1124_v50 = vmul.f32 1.442695, %v1094_v46  ;;  %v1095_v34 = vmul.f32 0.5, %v1078_v47  ;;  %1852 = vst [vmem:[%s3517_s28 + $0x78] sm:$0xff] %v1078_v47 }
 0x2e6   : > { %v1171_v4 = vadd.f32 %v1155_v48, %v3598_v54 }
 0x2e7   : > { %2579 = vpow2.f32 %v1124_v50  ;;  %v1126_v51 = vmul.f32 1.442695, %v1095_v34 }
 0x2e8   : > { %v1181_v21 = vpack.c.bf16 %v1171_v4, %v1170_v49 }
 0x2e9   : > { %v2576_v40 = vpop.eup %2575  ;;  %2581 = vpow2.f32 %v1126_v51 }
 0x2ea   : > { %2343 = vmatmul.mubr.bf16.gmra.mrb[40].mxu0 %v1181_v21  ;;  %v1156_v5 = vmul.f32 %v2576_v40, %v1140_v53 }
 0x2eb   : > { %v2578_v6 = vpop.eup %2577 }
 0x2ec   : > { %v1157_v8 = vmul.f32 %v2578_v6, %v1141_v63  ;;  %v1172_v52 = vadd.f32 %v1156_v5, %v3612_v56  ;;  %v2550_v56 = vld [vmem:[#allocation10 + $0x74] ss:$8 sps:$4 sm:$0xff]  }
 0x2ed   : > { %1498 = vmatprep.subr.bf16.mxu0 %v2550_v56  ;;  %2357 = vmatprep.subr.bf16.mxu1 %v2550_v56 }
 0x2ee   : > { %v1173_v9 = vadd.f32 %v1157_v8, %v1066_v58  ;;  %1499 = vmatpush1.bf16.msra.mxu0 %v2548_v22  ;;  %2365 = vmatpush1.bf16.msra.mxu1 %v2548_v22 }
 0x2f0   : > { %v1182_v55 = vpack.c.bf16 %v1173_v9, %v1172_v52 }
 0x2f1   : > { %v2580_v7 = vpop.eup %2579 }
 0x2f2   : > { %2346 = vmatprep.mubr.bf16.mxu0 %v1182_v55  ;;  %v1158_v54 = vmul.f32 %v2580_v7, %v1142_v10 }
 0x2f3   : > { %v2582_v13 = vpop.eup %2581 }
 0x2f4   : > { %v1159_v14 = vmul.f32 %v2582_v13, %v1143_v12  ;;  %v1174_v15 = vadd.f32 %v1158_v54, %v1072_v60 }
 0x2f6   : > { %v1175_v17 = vadd.f32 %v1159_v14, %v1076_v25 }
 0x2f8   : > { %v1183_v18 = vpack.c.bf16 %v1175_v17, %v1174_v15 }
 0x2fa   : > { %2347 = vmatmul.mubr.bf16.gmra.mrb[44].mxu0 %v1183_v18 }
 0x2fb   : > { %1516 = vmatprep.mubr.bf16.mxu0 %v3035_v16 }
 0x39d   : > { %v2336_v23 = vpop.f32.mrb[32].mxu0 }
 0x39e   : > { %v1298_v11 = vadd.f32 %v2336_v23, %v2162_v57  ;;  %v1289_v24 = vpop.f32.mrb[33].mxu0 }
 0x39f   : > { %v1290_v58 = vadd.f32 %v2162_v57, %v1289_v24  ;;  %v2337_v26 = vpop.f32.mrb[34].mxu0 }
 0x3a0   : > { %v1301_v27 = vadd.f32 %v2337_v26, %v2162_v57  ;;  %v1292_v28 = vpop.f32.mrb[35].mxu0  ;;  %v1354_v59 = vmax.f32 %v1298_v11, 0.0 }
 0x3a1   : > { %v1293_v29 = vadd.f32 %v2162_v57, %v1292_v28  ;;  %v1352_v32 = vmax.f32 %v1290_v58, 0.0 }
 0x3a2   : > { %v1355_v31 = vmax.f32 %v1301_v27, 0.0 }
 0x3a3   : > { %v1353_v33 = vmax.f32 %v1293_v29, 0.0 }
 0x3a4   : > { %v1369_v20 = vpack.c.bf16 %v1355_v31, %v1354_v59 }
 0x3a5   : > { %v1368_v35 = vpack.c.bf16 %v1353_v33, %v1352_v32 }
 0x3a7   : > { %1517 = vmatmul.mubr.bf16.vlgmr.msra.gmra.mrb[48].mxu0 %v1368_v35 }
 0x3a8   : > { %1526 = vmatprep.mubr.bf16.mxu0 %v3035_v16 }
 0x3ad   : > { %v2340_v36 = vpop.f32.mrb[36].mxu0 }
 0x3ae   : > { %v1314_v37 = vadd.f32 %v2340_v36, %v2162_v57  ;;  %v1305_v38 = vpop.f32.mrb[37].mxu0 }
 0x3af   : > { %v1306_v60 = vadd.f32 %v2162_v57, %v1305_v38  ;;  %v2341_v39 = vpop.f32.mrb[38].mxu0  ;;  %1527 = vmatmul.mubr.bf16.gmra.mrb[52].mxu0 %v1369_v20 }
 0x3b0   : > { %v1317_v30 = vadd.f32 %v2341_v39, %v2162_v57  ;;  %v1308_v61 = vpop.f32.mrb[39].mxu0  ;;  %v1358_v42 = vmax.f32 %v1314_v37, 0.0 }
 0x3b1   : > { %v1309_v41 = vadd.f32 %v2162_v57, %v1308_v61  ;;  %v1356_v25 = vmax.f32 %v1306_v60, 0.0 }
 0x3b2   : > { %v1359_v43 = vmax.f32 %v1317_v30, 0.0 }
 0x3b3   : > { %v1357_v44 = vmax.f32 %v1309_v41, 0.0 }
 0x3b4   : > { %v1371_v62 = vpack.c.bf16 %v1359_v43, %v1358_v42 }
 0x3b5   : > { %v1370_v45 = vpack.c.bf16 %v1357_v44, %v1356_v25 }
 0x3b7   : > { %1537 = vmatmul.mubr.bf16.vlgmr.msra.gmra.mrb[32].mxu1 %v1370_v45 }
 0x3b8   : > { %1546 = vmatprep.mubr.bf16.mxu1 %v3035_v16 }
 0x3bd   : > { %v2344_v46 = vpop.f32.mrb[40].mxu0 }
 0x3be   : > { %v1330_v47 = vadd.f32 %v2344_v46, %v2162_v57  ;;  %v1321_v48 = vpop.f32.mrb[41].mxu0 }
 0x3bf   : > { %v1322_v49 = vadd.f32 %v2162_v57, %v1321_v48  ;;  %v2345_v50 = vpop.f32.mrb[42].mxu0  ;;  %1547 = vmatmul.mubr.bf16.gmra.mrb[36].mxu1 %v1371_v62 }
 0x3c0   : > { %v1333_v34 = vadd.f32 %v2345_v50, %v2162_v57  ;;  %v1324_v4 = vpop.f32.mrb[43].mxu0  ;;  %1556 = vmatprep.mubr.bf16.mxu1 %v3035_v16  ;;  %v1362_v53 = vmax.f32 %v1330_v47, 0.0 }
 0x3c1   : > { %v1325_v51 = vadd.f32 %v2162_v57, %v1324_v4  ;;  %v1360_v40 = vmax.f32 %v1322_v49, 0.0 }
 0x3c2   : > { %v1363_v21 = vmax.f32 %v1333_v34, 0.0 }
 0x3c3   : > { %v1361_v63 = vmax.f32 %v1325_v51, 0.0 }
 0x3c4   : > { %v1373_v5 = vpack.c.bf16 %v1363_v21, %v1362_v53 }
 0x3c5   : > { %v1372_v6 = vpack.c.bf16 %v1361_v63, %v1360_v40 }
 0x3c7   : > { %1557 = vmatmul.mubr.bf16.gmra.mrb[40].mxu1 %v1372_v6 }
 0x3c8   : > { %1566 = vmatprep.mubr.bf16.mxu1 %v3035_v16 }
 0x3cd   : > { %v2348_v8 = vpop.f32.mrb[44].mxu0 }
 0x3ce   : > { %v1346_v52 = vadd.f32 %v2348_v8, %v2162_v57  ;;  %v1337_v9 = vpop.f32.mrb[45].mxu0 }
 0x3cf   : > { %v1338_v10 = vadd.f32 %v2162_v57, %v1337_v9  ;;  %v2349_v55 = vpop.f32.mrb[46].mxu0  ;;  %1567 = vmatmul.mubr.bf16.gmra.mrb[44].mxu1 %v1373_v5 }
 0x3d0   : > { %v1349_v7 = vadd.f32 %v2349_v55, %v2162_v57  ;;  %v1340_v12 = vpop.f32.mrb[47].mxu0  ;;  %1576 = vmatprep.mubr.bf16.mxu1 %v3035_v16  ;;  %v1366_v13 = vmax.f32 %v1346_v52, 0.0 }
 0x3d1   : > { %v1341_v54 = vadd.f32 %v2162_v57, %v1340_v12  ;;  %v1364_v15 = vmax.f32 %v1338_v10, 0.0 }
 0x3d2   : > { %v1367_v14 = vmax.f32 %v1349_v7, 0.0 }
 0x3d3   : > { %v1365_v17 = vmax.f32 %v1341_v54, 0.0 }
 0x3d4   : > { %v1375_v18 = vpack.c.bf16 %v1367_v14, %v1366_v13 }
 0x3d5   : > { %v1374_v19 = vpack.c.bf16 %v1365_v17, %v1364_v15 }
 0x3d7   : > { %1577 = vmatmul.mubr.bf16.gmra.mrb[48].mxu1 %v1374_v19 }
 0x3d8   : > { %1586 = vmatprep.mubr.bf16.mxu1 %v3035_v16 }
 0x3df   : > { %1587 = vmatmul.mubr.bf16.gmra.mrb[52].mxu1 %v1375_v18 }
 0x3e0   : > { %2896 = shalt.err (!%p2893_p5)
}
 0x3e1   : > { %s2897_s17 = scalar_lea.hbm %s3663_s0, 2048  ;;  %s2901_s11 = scalar_lea.hbm %s3914_s14, 4096 }
 0x3e2   : > { %p2898_p9 = scmp.ne.s32.totalorder %s3663_s0, %s2897_s17  ;;  %p2902_p7 = scmp.lt.u32.totalorder %s3663_s0, %s3914_s14 }
 0x3e3   : > { %p2903_p12 = scmp.lt.u32.totalorder %s2901_s11, %s2897_s17  ;;  %p2905_p1 = scmp.lt.u32.totalorder %s2897_s17, %s3663_s0 }
 0x3e4   : > { %p2899_p8 = pnand %p2898_p9, %p3275_p10 }
 0x3e5   : > { %p2904_p2 = por %p2903_p12, %p2902_p7 }
 0x3e6   : > { %p2900_p11 = pneg %p2899_p8 }
 0x3e7   : > { %p2906_p13 = por %p2905_p1, %p2904_p2 }
 0x3e9   : > { %p2907_p0 = pnand %p2906_p13, %p2900_p11 }
 0x3eb   : > { %2910 = shalt.err (!%p2907_p0)
}
 0x3ec   : > { %s3037_s27 = smov 128   ;;  %s3038_s30 = smov 8  }
 0x3ed   : > { %2387 = dma.vmem_to_hbm [thread:$0]  (%p3275_p10), %s3666_s1, 2048, %s3663_s0, %s3668_s29, %s3037_s27, %s3037_s27, %s3038_s30  }
 0x3ee   : > { %s3915_s17 = sld [smem:[#allocation31_spill]]  ;;  %s1910_s15 = sshll.u32 %s3517_s28, 4  ;;  %s3703_s15 = int_to_ptr.vmem [resolvable:$true] %s1910_s15 }
 0x3ef   : > { %s2911_s11 = scalar_lea.vmem %s3703_s15, 2048  ;;  %s3039_s16 = smov [#allocation16]  }
 0x3f0   : > { %p2912_p4 = scmp.ne.s32.totalorder %s3703_s15, %s2911_s11  ;;  %s2915_s8 = sshll.u32 %s3039_s16, 4  ;;  %s2916_s8 = int_to_ptr.vmem [resolvable:$false] %s2915_s8 }
 0x3f1   : > { %s2917_s0 = scalar_lea.vmem %s2916_s8, 4096  ;;  %p2918_p5 = scmp.lt.s32.totalorder %s3703_s15, %s2916_s8 }
 0x3f2   : > { %p2913_p6 = pnand %p2912_p4, %p3275_p10  ;;  %p2919_p9 = scmp.lt.s32.totalorder %s2917_s0, %s2911_s11 }
 0x3f4   : > { %s3700_s18 = scalar_lea.hbm %s3915_s17, %s2236_s3  ;;  %p2914_p3 = pneg %p2913_p6 }
 0x3f5   : > { %p2920_p8 = por %p2919_p9, %p2918_p5 }
 0x3f7   : > { %p2921_p11 = pnand %p2920_p8, %p2914_p3 }
 0x3f9   : > { %2924 = shalt.err (!%p2921_p11)
}
 0x3fa   : > { %s2925_s28 = scalar_lea.hbm %s3700_s18, 2048  ;;  %s2929_s26 = scalar_lea.hbm %s3915_s17, 4096 }
 0x3fb   : > { %p2926_p7 = scmp.ne.s32.totalorder %s3700_s18, %s2925_s28  ;;  %p2930_p1 = scmp.lt.u32.totalorder %s3700_s18, %s3915_s17 }
 0x3fc   : > { %p2931_p13 = scmp.lt.u32.totalorder %s2929_s26, %s2925_s28  ;;  %p2933_p4 = scmp.lt.u32.totalorder %s2925_s28, %s3700_s18 }
 0x3fd   : > { %p2927_p12 = pnand %p2926_p7, %p3275_p10 }
 0x3fe   : > { %p2932_p0 = por %p2931_p13, %p2930_p1 }
 0x3ff   : > { %p2928_p2 = pneg %p2927_p12 }
 0x400   : > { %p2934_p6 = por %p2933_p4, %p2932_p0 }
 0x402   : > { %p2935_p3 = pnand %p2934_p6, %p2928_p2 }
 0x404   : > { %2938 = shalt.err (!%p2935_p3)
}
 0x405   : > { %2388 = dma.vmem_to_hbm [thread:$0]  (%p3275_p10), %s3703_s15, 2048, %s3700_s18, %s3668_s29, %s3037_s27, %s3037_s27, %s3038_s30  }
 0x406   : > { %s3916_s0 = sld [smem:[#allocation28_spill]]  ;;  %s3759_s29 = scalar_lea.vmem [#allocation13], %s2120_s19 }
 0x407   : > { %s2235_s19 = sshll.u32 %s3129_s25, 12  ;;  %s1878_s27 = sshll.u32 %s3759_s29, 4  ;;  %s3813_s27 = int_to_ptr.vmem [resolvable:$true] %s1878_s27 }
 0x408   : > { %s3917_s15 = sld [smem:[#allocation29_spill]]  ;;  %s1854_s25 = scalar_lea.sflag [#allocation4], %s3368_s13 }
 0x409   : > { %s2939_s3 = scalar_lea.vmem %s3813_s27, 4096  ;;  %s3040_s1 = smov [#allocation13]  }
 0x40a   : > { %p2940_p5 = scmp.ne.s32.totalorder %s3813_s27, %s2939_s3  ;;  %s2943_s26 = sshll.u32 %s3040_s1, 4  ;;  %s2944_s26 = int_to_ptr.vmem [resolvable:$false] %s2943_s26 }
 0x40b   : > { %s2945_s10 = scalar_lea.vmem %s2944_s26, 8192  ;;  %p2946_p11 = scmp.lt.s32.totalorder %s3813_s27, %s2944_s26 }
 0x40c   : > { %v1392_v16 = vld [vmem:[%s3916_s0] sm:$0x3]  ;;  %p2941_p9 = pnand %p2940_p5, %p3275_p10  ;;  %p2947_p7 = scmp.lt.s32.totalorder %s2945_s10, %s2939_s3 }
 0x40d   : > { %v3735_v2 = vrot.slane %v1392_v16, %v879_v1  ;;  %v3739_v56 = vrot.slane %v1392_v16, %v883_v3 }
 0x40e   : > { %s3811_s28 = scalar_lea.hbm %s3917_s15, %s2235_s19  ;;  %p2942_p8 = pneg %p2941_p9 }
 0x40f   : > { %p2948_p12 = por %p2947_p7, %p2946_p11 }
 0x411   : > { %p2949_p2 = pnand %p2948_p12, %p2942_p8 }
 0x47a   : > { %v1518_v22 = vpop.f32.mrb[48].mxu0 }
 0x47b   : > { %v1519_v57 = vadd.f32 %v1518_v22, %v3735_v2  ;;  %v1520_v23 = vpop.f32.mrb[49].mxu0 }
 0x47c   : > { %v1521_v11 = vadd.f32 %v1520_v23, %v3739_v56  ;;  %v1522_v24 = vpop.f32.mrb[50].mxu0 }
 0x47d   : > { %v2187_v58 = vmul.f32 -1.442695, %v1519_v57  ;;  %v1523_v26 = vadd.f32 %v1522_v24, %v3735_v2  ;;  %v1524_v27 = vpop.f32.mrb[51].mxu0 }
 0x47e   : > { %v2188_v28 = vmul.f32 -1.442695, %v1521_v11  ;;  %v1525_v29 = vadd.f32 %v1524_v27, %v3739_v56 }
 0x47f   : > { %2583 = vpow2.f32 %v2187_v58  ;;  %v2189_v1 = vmul.f32 -1.442695, %v1523_v26 }
 0x480   : > { %2585 = vpow2.f32 %v2188_v28  ;;  %v2190_v0 = vmul.f32 -1.442695, %v1525_v29 }
 0x481   : > { %2587 = vpow2.f32 %v2189_v1 }
 0x482   : > { %2589 = vpow2.f32 %v2190_v0  ;;  %v1528_v3 = vpop.f32.mrb[52].mxu0 }
 0x483   : > { %v1529_v59 = vadd.f32 %v1528_v3, %v3735_v2  ;;  %v1530_v31 = vpop.f32.mrb[53].mxu0 }
 0x484   : > { %v1531_v32 = vadd.f32 %v1530_v31, %v3739_v56  ;;  %v1532_v33 = vpop.f32.mrb[54].mxu0 }
 0x485   : > { %v2191_v20 = vmul.f32 -1.442695, %v1529_v59  ;;  %v1533_v35 = vadd.f32 %v1532_v33, %v3735_v2  ;;  %v1534_v36 = vpop.f32.mrb[55].mxu0 }
 0x486   : > { %v2192_v37 = vmul.f32 -1.442695, %v1531_v32  ;;  %v1535_v38 = vadd.f32 %v1534_v36, %v3739_v56 }
 0x487   : > { %2591 = vpow2.f32 %v2191_v20  ;;  %v2193_v60 = vmul.f32 -1.442695, %v1533_v35 }
 0x488   : > { %2593 = vpow2.f32 %v2192_v37  ;;  %v2194_v39 = vmul.f32 -1.442695, %v1535_v38 }
 0x489   : > { %v2584_v30 = vpop.eup %2583  ;;  %2595 = vpow2.f32 %v2193_v60 }
 0x48a   : > { %v2586_v61 = vpop.eup %2585  ;;  %v1693_v41 = vadd.f32 1.0, %v2584_v30  ;;  %2597 = vpow2.f32 %v2194_v39  ;;  %v1538_v42 = vpop.f32.mrb[32].mxu1 }
 0x48b   : > { %v2588_v43 = vpop.eup %2587  ;;  %v1694_v25 = vadd.f32 1.0, %v2586_v61  ;;  %v1539_v44 = vadd.f32 %v1538_v42, %v3735_v2  ;;  %v1540_v62 = vpop.f32.mrb[33].mxu1 }
 0x48c   : > { %v2590_v45 = vpop.eup %2589  ;;  %2599 = vrcp.f32 %v1693_v41  ;;  %v1695_v46 = vadd.f32 1.0, %v2588_v43  ;;  %v1541_v47 = vadd.f32 %v1540_v62, %v3739_v56  ;;  %v1542_v48 = vpop.f32.mrb[34].mxu1 }
 0x48d   : > { %2601 = vrcp.f32 %v1694_v25  ;;  %v1696_v49 = vadd.f32 1.0, %v2590_v45  ;;  %v2195_v50 = vmul.f32 -1.442695, %v1539_v44  ;;  %v1543_v34 = vadd.f32 %v1542_v48, %v3735_v2  ;;  %v1544_v4 = vpop.f32.mrb[35].mxu1 }
 0x48e   : > { %2603 = vrcp.f32 %v1695_v46  ;;  %v2196_v51 = vmul.f32 -1.442695, %v1541_v47  ;;  %v1545_v53 = vadd.f32 %v1544_v4, %v3739_v56 }
 0x48f   : > { %2605 = vrcp.f32 %v1696_v49  ;;  %v2197_v21 = vmul.f32 -1.442695, %v1543_v34 }
 0x490   : > { %2607 = vpow2.f32 %v2195_v50  ;;  %v2198_v40 = vmul.f32 -1.442695, %v1545_v53 }
 0x491   : > { %v2592_v63 = vpop.eup %2591  ;;  %2609 = vpow2.f32 %v2196_v51 }
 0x492   : > { %v2594_v5 = vpop.eup %2593  ;;  %v1697_v6 = vadd.f32 1.0, %v2592_v63  ;;  %2611 = vpow2.f32 %v2197_v21  ;;  %v1548_v8 = vpop.f32.mrb[36].mxu1 }
 0x493   : > { %v2596_v52 = vpop.eup %2595  ;;  %v1698_v9 = vadd.f32 1.0, %v2594_v5  ;;  %2613 = vpow2.f32 %v2198_v40  ;;  %v1549_v10 = vadd.f32 %v1548_v8, %v3735_v2  ;;  %v1550_v55 = vpop.f32.mrb[37].mxu1 }
 0x494   : > { %v2598_v7 = vpop.eup %2597  ;;  %2615 = vrcp.f32 %v1697_v6  ;;  %v1699_v12 = vadd.f32 1.0, %v2596_v52  ;;  %v1551_v54 = vadd.f32 %v1550_v55, %v3739_v56  ;;  %v1552_v13 = vpop.f32.mrb[38].mxu1 }
 0x495   : > { %2617 = vrcp.f32 %v1698_v9  ;;  %v1700_v14 = vadd.f32 1.0, %v2598_v7  ;;  %v2199_v15 = vmul.f32 -1.442695, %v1549_v10  ;;  %v1553_v17 = vadd.f32 %v1552_v13, %v3735_v2  ;;  %v1554_v18 = vpop.f32.mrb[39].mxu1 }
 0x496   : > { %v2600_v19 = vpop.eup %2599  ;;  %2619 = vrcp.f32 %v1699_v12  ;;  %v2200_v16 = vmul.f32 -1.442695, %v1551_v54  ;;  %v1555_v22 = vadd.f32 %v1554_v18, %v3739_v56 }
 0x497   : > { %v2602_v57 = vpop.eup %2601  ;;  %1789 = vst [vmem:[%s3759_s29] sm:$0xff] %v2600_v19  ;;  %2621 = vrcp.f32 %v1700_v14  ;;  %v2201_v23 = vmul.f32 -1.442695, %v1553_v17 }
 0x498   : > { %v2604_v11 = vpop.eup %2603  ;;  %1790 = vst [vmem:[%s3759_s29 + $0x8] sm:$0xff] %v2602_v57  ;;  %2623 = vpow2.f32 %v2199_v15  ;;  %v2202_v24 = vmul.f32 -1.442695, %v1555_v22 }
 0x499   : > { %v2606_v58 = vpop.eup %2605  ;;  %1791 = vst [vmem:[%s3759_s29 + $0x10] sm:$0xff] %v2604_v11  ;;  %2625 = vpow2.f32 %v2200_v16 }
 0x49a   : > { %v2608_v26 = vpop.eup %2607  ;;  %1792 = vst [vmem:[%s3759_s29 + $0x18] sm:$0xff] %v2606_v58  ;;  %2627 = vpow2.f32 %v2201_v23  ;;  %v1558_v27 = vpop.f32.mrb[40].mxu1 }
 0x49b   : > { %v2610_v28 = vpop.eup %2609  ;;  %v1701_v29 = vadd.f32 1.0, %v2608_v26  ;;  %2629 = vpow2.f32 %v2202_v24  ;;  %v1559_v1 = vadd.f32 %v1558_v27, %v3735_v2  ;;  %v1560_v0 = vpop.f32.mrb[41].mxu1 }
 0x49c   : > { %v2612_v3 = vpop.eup %2611  ;;  %v1702_v59 = vadd.f32 1.0, %v2610_v28  ;;  %v1561_v31 = vadd.f32 %v1560_v0, %v3739_v56  ;;  %v1562_v32 = vpop.f32.mrb[42].mxu1 }
 0x49d   : > { %v2614_v33 = vpop.eup %2613  ;;  %2631 = vrcp.f32 %v1701_v29  ;;  %v1703_v20 = vadd.f32 1.0, %v2612_v3  ;;  %v2203_v35 = vmul.f32 -1.442695, %v1559_v1  ;;  %v1563_v36 = vadd.f32 %v1562_v32, %v3735_v2  ;;  %v1564_v37 = vpop.f32.mrb[43].mxu1 }
 0x49e   : > { %v2616_v38 = vpop.eup %2615  ;;  %2633 = vrcp.f32 %v1702_v59  ;;  %v1704_v60 = vadd.f32 1.0, %v2614_v33  ;;  %v2204_v39 = vmul.f32 -1.442695, %v1561_v31  ;;  %v1565_v30 = vadd.f32 %v1564_v37, %v3739_v56 }
 0x49f   : > { %v2618_v61 = vpop.eup %2617  ;;  %1793 = vst [vmem:[%s3759_s29 + $0x20] sm:$0xff] %v2616_v38  ;;  %2635 = vrcp.f32 %v1703_v20  ;;  %v2205_v41 = vmul.f32 -1.442695, %v1563_v36 }
 0x4a0   : > { %v2620_v42 = vpop.eup %2619  ;;  %1794 = vst [vmem:[%s3759_s29 + $0x28] sm:$0xff] %v2618_v61  ;;  %2637 = vrcp.f32 %v1704_v60  ;;  %v2206_v43 = vmul.f32 -1.442695, %v1565_v30 }
 0x4a1   : > { %v2622_v25 = vpop.eup %2621  ;;  %1795 = vst [vmem:[%s3759_s29 + $0x30] sm:$0xff] %v2620_v42  ;;  %2639 = vpow2.f32 %v2203_v35 }
 0x4a2   : > { %v2624_v44 = vpop.eup %2623  ;;  %1796 = vst [vmem:[%s3759_s29 + $0x38] sm:$0xff] %v2622_v25  ;;  %2641 = vpow2.f32 %v2204_v39  ;;  %v1568_v62 = vpop.f32.mrb[44].mxu1 }
 0x4a3   : > { %v2626_v45 = vpop.eup %2625  ;;  %v1705_v46 = vadd.f32 1.0, %v2624_v44  ;;  %2643 = vpow2.f32 %v2205_v41  ;;  %v1569_v47 = vadd.f32 %v1568_v62, %v3735_v2  ;;  %v1570_v48 = vpop.f32.mrb[45].mxu1 }
 0x4a4   : > { %v2628_v49 = vpop.eup %2627  ;;  %v1706_v50 = vadd.f32 1.0, %v2626_v45  ;;  %2645 = vpow2.f32 %v2206_v43  ;;  %v1571_v34 = vadd.f32 %v1570_v48, %v3739_v56  ;;  %v1572_v4 = vpop.f32.mrb[46].mxu1 }
 0x4a5   : > { %v2630_v51 = vpop.eup %2629  ;;  %2647 = vrcp.f32 %v1705_v46  ;;  %v1707_v53 = vadd.f32 1.0, %v2628_v49  ;;  %v2207_v21 = vmul.f32 -1.442695, %v1569_v47  ;;  %v1573_v40 = vadd.f32 %v1572_v4, %v3735_v2  ;;  %v1574_v63 = vpop.f32.mrb[47].mxu1 }
 0x4a6   : > { %2649 = vrcp.f32 %v1706_v50  ;;  %v1708_v5 = vadd.f32 1.0, %v2630_v51  ;;  %v2208_v6 = vmul.f32 -1.442695, %v1571_v34  ;;  %v1575_v8 = vadd.f32 %v1574_v63, %v3739_v56 }
 0x4a7   : > { %v2632_v52 = vpop.eup %2631  ;;  %2651 = vrcp.f32 %v1707_v53  ;;  %v2209_v9 = vmul.f32 -1.442695, %v1573_v40 }
 0x4a8   : > { %v2634_v10 = vpop.eup %2633  ;;  %1797 = vst [vmem:[%s3759_s29 + $0x40] sm:$0xff] %v2632_v52  ;;  %2653 = vrcp.f32 %v1708_v5  ;;  %v2210_v55 = vmul.f32 -1.442695, %v1575_v8 }
 0x4a9   : > { %v2636_v7 = vpop.eup %2635  ;;  %1798 = vst [vmem:[%s3759_s29 + $0x48] sm:$0xff] %v2634_v10  ;;  %2655 = vpow2.f32 %v2207_v21 }
 0x4aa   : > { %v2638_v12 = vpop.eup %2637  ;;  %1799 = vst [vmem:[%s3759_s29 + $0x50] sm:$0xff] %v2636_v7  ;;  %2657 = vpow2.f32 %v2208_v6  ;;  %v1578_v54 = vpop.f32.mrb[48].mxu1 }
 0x4ab   : > { %v2640_v13 = vpop.eup %2639  ;;  %1800 = vst [vmem:[%s3759_s29 + $0x58] sm:$0xff] %v2638_v12  ;;  %2659 = vpow2.f32 %v2209_v9  ;;  %v1579_v14 = vadd.f32 %v1578_v54, %v3735_v2  ;;  %v1580_v15 = vpop.f32.mrb[49].mxu1 }
 0x4ac   : > { %v2642_v17 = vpop.eup %2641  ;;  %v1709_v18 = vadd.f32 1.0, %v2640_v13  ;;  %2661 = vpow2.f32 %v2210_v55  ;;  %v1581_v19 = vadd.f32 %v1580_v15, %v3739_v56  ;;  %v1582_v16 = vpop.f32.mrb[50].mxu1 }
 0x4ad   : > { %v2644_v22 = vpop.eup %2643  ;;  %v1710_v57 = vadd.f32 1.0, %v2642_v17  ;;  %v1583_v23 = vadd.f32 %v1582_v16, %v3735_v2  ;;  %v1584_v11 = vpop.f32.mrb[51].mxu1  ;;  %v2211_v26 = vmul.f32 -1.442695, %v1579_v14 }
 0x4ae   : > { %v2646_v24 = vpop.eup %2645  ;;  %2663 = vrcp.f32 %v1709_v18  ;;  %v1711_v58 = vadd.f32 1.0, %v2644_v22  ;;  %v1585_v27 = vadd.f32 %v1584_v11, %v3739_v56  ;;  %v2212_v1 = vmul.f32 -1.442695, %v1581_v19 }
 0x4af   : > { %v2648_v28 = vpop.eup %2647  ;;  %2665 = vrcp.f32 %v1710_v57  ;;  %v1712_v29 = vadd.f32 1.0, %v2646_v24  ;;  %v2213_v3 = vmul.f32 -1.442695, %v1583_v23 }
 0x4b0   : > { %v2650_v0 = vpop.eup %2649  ;;  %1801 = vst [vmem:[%s3759_s29 + $0x60] sm:$0xff] %v2648_v28  ;;  %2667 = vrcp.f32 %v1711_v58  ;;  %v2214_v31 = vmul.f32 -1.442695, %v1585_v27 }
 0x4b1   : > { %v2652_v59 = vpop.eup %2651  ;;  %1802 = vst [vmem:[%s3759_s29 + $0x68] sm:$0xff] %v2650_v0  ;;  %2669 = vrcp.f32 %v1712_v29 }
 0x4b2   : > { %v2654_v32 = vpop.eup %2653  ;;  %1803 = vst [vmem:[%s3759_s29 + $0x70] sm:$0xff] %v2652_v59  ;;  %2671 = vpow2.f32 %v2211_v26  ;;  %v1588_v33 = vpop.f32.mrb[52].mxu1 }
 0x4b3   : > { %v2656_v20 = vpop.eup %2655  ;;  %1804 = vst [vmem:[%s3759_s29 + $0x78] sm:$0xff] %v2654_v32  ;;  %2673 = vpow2.f32 %v2212_v1  ;;  %v1589_v35 = vadd.f32 %v1588_v33, %v3735_v2  ;;  %v1590_v36 = vpop.f32.mrb[53].mxu1 }
 0x4b4   : > { %v2658_v37 = vpop.eup %2657  ;;  %v1713_v38 = vadd.f32 1.0, %v2656_v20  ;;  %2675 = vpow2.f32 %v2213_v3  ;;  %v1591_v60 = vadd.f32 %v1590_v36, %v3739_v56  ;;  %v1592_v39 = vpop.f32.mrb[54].mxu1 }
 0x4b5   : > { %v2660_v30 = vpop.eup %2659  ;;  %v1714_v61 = vadd.f32 1.0, %v2658_v37  ;;  %2677 = vpow2.f32 %v2214_v31  ;;  %v1593_v41 = vadd.f32 %v1592_v39, %v3735_v2  ;;  %v1594_v42 = vpop.f32.mrb[55].mxu1  ;;  %v2215_v44 = vmul.f32 -1.442695, %v1589_v35 }
 0x4b6   : > { %v2662_v43 = vpop.eup %2661  ;;  %2679 = vrcp.f32 %v1713_v38  ;;  %v1715_v25 = vadd.f32 1.0, %v2660_v30  ;;  %v1595_v62 = vadd.f32 %v1594_v42, %v3739_v56  ;;  %v2216_v46 = vmul.f32 -1.442695, %v1591_v60 }
 0x4b7   : > { %2681 = vrcp.f32 %v1714_v61  ;;  %v1716_v45 = vadd.f32 1.0, %v2662_v43  ;;  %v2217_v48 = vmul.f32 -1.442695, %v1593_v41 }
 0x4b8   : > { %v2664_v47 = vpop.eup %2663  ;;  %2683 = vrcp.f32 %v1715_v25  ;;  %v2218_v2 = vmul.f32 -1.442695, %v1595_v62 }
 0x4b9   : > { %v2666_v49 = vpop.eup %2665  ;;  %1805 = vst [vmem:[%s3759_s29 + $0x80] sm:$0xff] %v2664_v47  ;;  %2685 = vrcp.f32 %v1716_v45 }
 0x4ba   : > { %v2668_v50 = vpop.eup %2667  ;;  %1806 = vst [vmem:[%s3759_s29 + $0x88] sm:$0xff] %v2666_v49  ;;  %2687 = vpow2.f32 %v2215_v44 }
 0x4bb   : > { %v2670_v34 = vpop.eup %2669  ;;  %1807 = vst [vmem:[%s3759_s29 + $0x90] sm:$0xff] %v2668_v50  ;;  %2689 = vpow2.f32 %v2216_v46 }
 0x4bc   : > { %v2672_v4 = vpop.eup %2671  ;;  %1808 = vst [vmem:[%s3759_s29 + $0x98] sm:$0xff] %v2670_v34  ;;  %2691 = vpow2.f32 %v2217_v48 }
 0x4bd   : > { %v2674_v56 = vpop.eup %2673  ;;  %v1717_v51 = vadd.f32 1.0, %v2672_v4  ;;  %2693 = vpow2.f32 %v2218_v2 }
 0x4be   : > { %v2676_v53 = vpop.eup %2675  ;;  %v1718_v21 = vadd.f32 1.0, %v2674_v56 }
 0x4bf   : > { %v2678_v40 = vpop.eup %2677  ;;  %2695 = vrcp.f32 %v1717_v51  ;;  %v1719_v63 = vadd.f32 1.0, %v2676_v53 }
 0x4c0   : > { %v2680_v5 = vpop.eup %2679  ;;  %2697 = vrcp.f32 %v1718_v21  ;;  %v1720_v6 = vadd.f32 1.0, %v2678_v40 }
 0x4c1   : > { %v2682_v8 = vpop.eup %2681  ;;  %1809 = vst [vmem:[%s3759_s29 + $0xa0] sm:$0xff] %v2680_v5  ;;  %2699 = vrcp.f32 %v1719_v63 }
 0x4c2   : > { %v2684_v52 = vpop.eup %2683  ;;  %1810 = vst [vmem:[%s3759_s29 + $0xa8] sm:$0xff] %v2682_v8  ;;  %2701 = vrcp.f32 %v1720_v6 }
 0x4c3   : > { %v2686_v9 = vpop.eup %2685  ;;  %1811 = vst [vmem:[%s3759_s29 + $0xb0] sm:$0xff] %v2684_v52 }
 0x4c4   : > { %v2688_v10 = vpop.eup %2687  ;;  %1812 = vst [vmem:[%s3759_s29 + $0xb8] sm:$0xff] %v2686_v9 }
 0x4c5   : > { %v2690_v55 = vpop.eup %2689  ;;  %v1721_v7 = vadd.f32 1.0, %v2688_v10 }
 0x4c6   : > { %v2692_v12 = vpop.eup %2691  ;;  %v1722_v54 = vadd.f32 1.0, %v2690_v55 }
 0x4c7   : > { %v2694_v13 = vpop.eup %2693  ;;  %2703 = vrcp.f32 %v1721_v7  ;;  %v1723_v14 = vadd.f32 1.0, %v2692_v12 }
 0x4c8   : > { %2705 = vrcp.f32 %v1722_v54  ;;  %v1724_v15 = vadd.f32 1.0, %v2694_v13 }
 0x4c9   : > { %v2696_v17 = vpop.eup %2695  ;;  %2707 = vrcp.f32 %v1723_v14 }
 0x4ca   : > { %v2698_v18 = vpop.eup %2697  ;;  %1813 = vst [vmem:[%s3759_s29 + $0xc0] sm:$0xff] %v2696_v17  ;;  %2709 = vrcp.f32 %v1724_v15 }
 0x4cb   : > { %v2700_v19 = vpop.eup %2699  ;;  %1814 = vst [vmem:[%s3759_s29 + $0xc8] sm:$0xff] %v2698_v18 }
 0x4cc   : > { %v2702_v16 = vpop.eup %2701  ;;  %1815 = vst [vmem:[%s3759_s29 + $0xd0] sm:$0xff] %v2700_v19 }
 0x4cd   : > { %1816 = vst [vmem:[%s3759_s29 + $0xd8] sm:$0xff] %v2702_v16 }
 0x4d1   : > { %v2704_v22 = vpop.eup %2703 }
 0x4d2   : > { %v2706_v57 = vpop.eup %2705  ;;  %1817 = vst [vmem:[%s3759_s29 + $0xe0] sm:$0xff] %v2704_v22 }
 0x4d3   : > { %v2708_v23 = vpop.eup %2707  ;;  %1818 = vst [vmem:[%s3759_s29 + $0xe8] sm:$0xff] %v2706_v57 }
 0x4d4   : > { %v2710_v11 = vpop.eup %2709  ;;  %1819 = vst [vmem:[%s3759_s29 + $0xf0] sm:$0xff] %v2708_v23 }
 0x4d5   : > { %1820 = vst [vmem:[%s3759_s29 + $0xf8] sm:$0xff] %v2710_v11 }
 0x4d6   : > { %2952 = shalt.err (!%p2949_p2)
}
 0x4d7   : > { %s2953_s16 = scalar_lea.hbm %s3811_s28, 4096  ;;  %s2957_s0 = scalar_lea.hbm %s3917_s15, 8192 }
 0x4d8   : > { %p2954_p1 = scmp.ne.s32.totalorder %s3811_s28, %s2953_s16  ;;  %p2958_p4 = scmp.lt.u32.totalorder %s3811_s28, %s3917_s15 }
 0x4d9   : > { %p2959_p6 = scmp.lt.u32.totalorder %s2957_s0, %s2953_s16  ;;  %p2961_p5 = scmp.lt.u32.totalorder %s2953_s16, %s3811_s28 }
 0x4da   : > { %p2955_p13 = pnand %p2954_p1, %p3275_p10 }
 0x4db   : > { %p2960_p3 = por %p2959_p6, %p2958_p4 }
 0x4dc   : > { %p2956_p0 = pneg %p2955_p13 }
 0x4dd   : > { %p2962_p9 = por %p2961_p5, %p2960_p3 }
 0x4df   : > { %p2963_p8 = pnand %p2962_p9, %p2956_p0 }
 0x4e1   : > { %2966 = shalt.err (!%p2963_p8)
}
 0x4e2   : > { %s3041_s30 = smov 256   ;;  %s3042_s18 = smov 16  }
 0x4e3   : > { %2386 = dma.vmem_to_hbm [thread:$0]  (%p3275_p10), %s3813_s27, 4096, %s3811_s28, %s1854_s25, %s3041_s30, %s3041_s30, %s3042_s18  }
 0x4e4 PF: > { %s3918_s3 = sld [smem:[#allocation23_spill]]  ;;  %s3919_s1 = sld [smem:[#allocation24_spill]] }
 0x4e5   : > { %p3921_p7 = scmp.ge.s32.totalorder %s3021_s24, 2 }
 0x4ea   : > { %s1925_s26 = sand.u32 1, %s3918_s3   ;;  %p3920_p11 = scmp.ne.s32.totalorder %s3919_s1, 0 }
 0x4eb   : > { %s1926_s10 = scalar_lea.sflag [#allocation4], %s1925_s26 }
 0x4ec   : > { %p2413_p12 = pnand %p3921_p7, %p3920_p11 }
 0x4ee   : > { %3000 = dma.done.wait (!%p2413_p12), %s1926_s10, 4096  }
 0x4ef   : > { %3002 = vsyncadd (!%p2413_p12), %s1926_s10, 4294963200  ;;  %s3922_s16 = sadd.s32 4294967294, %s3021_s24  }
 0x4f0   : > { %s1934_s11 = sand.u32 1, %s3922_s16  }
 0x4f1   : > { %s1935_s8 = scalar_lea.sflag [#allocation15], %s1934_s11 }
 0x4f2   : > { %3004 = dma.done.wait (!%p2413_p12), %s1935_s8, 4096  }
 0x4f3   : > { %3006 = vsyncadd (!%p2413_p12), %s1935_s8, 4294963200  ;;  %s3923_s12 = smov %s3265_s21  ;;  %p34_p10 = scmp.ge.s32.totalorder %s3265_s21, 4  }
 0x4f4   : > { %s3924_s21 = smov %s3013_s22  ;;  %s3925_s22 = smov %s3017_s23 }
 0x4f5   : > { %s3926_s23 = smov %s3281_s20  ;;  %s3927_s24 = smov %s3923_s12 }
 0x4f6   :  { %36 = sbr.rel (!%p34_p10) target bundleno = 19 (0x13), region = 166 }
 0x4fd   :  { %1949 = vsyncpa [#allocation3], 1 }
 0x4fe   :  { %1951 = vsyncpa [#allocation3 + $0x1], 1 }
 0x4ff   :  { %1952 = vsyncpa [#allocation6], 1 }
 0x500   :  { %1953 = vsyncpa [#allocation9], 1 }
 0x501   :  { %1954 = vsyncpa [#allocation12], 1 }
 0x502   :  { %1956 = vsyncpa [#allocation12 + $0x1], 1 }
 0x503   :  { %1957 = vsyncpa [#allocation4], 1 }
 0x504   :  { %1959 = vsyncpa [#allocation4 + $0x1], 1 }
 0x505   :  { %1960 = vsyncpa [#allocation15], 1 }
 0x506   :  { %1962 = vsyncpa [#allocation15 + $0x1], 1 }

</bundles_post_ra>
